<compile_context>
chip_gen: v6e
topology: v6e:2x2x1
jax: 0.10.0
libtpu: 0.0.40
codegen_flags: <defaults>
</compile_context>

<pallas_src>
import functools

import jax
import jax.numpy as jnp
from jax.experimental import pallas as pl
from jax.experimental.pallas import tpu as pltpu


def _round_up(x, m):
    return ((x + m - 1) // m) * m


# ---------------------------------------------------------------------------
# Fused kernel: 3x GCNConv (+ReLU on all but last) -> mean pool -> Linear
# ---------------------------------------------------------------------------
def _gcn_fused_kernel(*refs, nb_layers):
    # inputs: x, a, dinv, (w_i, b_i) * nb_layers, pool, inv_counts, lin_w, lin_b
    # outputs: logits, pooled
    x_ref, a_ref, dinv_ref = refs[:3]
    conv_refs = refs[3:3 + 2 * nb_layers]
    pool_ref, invc_ref, lw_ref, lb_ref = refs[3 + 2 * nb_layers:3 + 2 * nb_layers + 4]
    logits_ref, pooled_ref = refs[-2:]

    dinv = dinv_ref[...]                       # [Np, 1]  f32
    a = a_ref[...]                             # [Np, Np] bf16 (exact small ints)

    h = x_ref[...]                             # [Np, Cp] f32
    for i in range(nb_layers):
        w_ref = conv_refs[2 * i]
        b_ref = conv_refs[2 * i + 1]
        # Feature transform (f32 on MXU, f32 accumulation).
        xw = jnp.dot(h, w_ref[...], preferred_element_type=jnp.float32)
        # Fold right D^{-1/2}; cast to bf16 for the memory-dominant aggregation.
        xw = (xw * dinv).astype(jnp.bfloat16)
        agg = jnp.dot(a, xw, preferred_element_type=jnp.float32)
        # Fold left D^{-1/2}, add bias.
        h = agg * dinv + b_ref[...]
        if i != nb_layers - 1:
            h = jnp.maximum(h, 0.0)            # ReLU on all but last conv

    # global_mean_pool: one-hot sum, then per-graph 1/count scale.
    pooled = jnp.dot(pool_ref[...], h, preferred_element_type=jnp.float32)
    pooled = pooled * invc_ref[...]
    pooled_ref[...] = pooled.astype(pooled_ref.dtype)

    # F.dropout(p=0.5, training=False) -> identity at inference.
    # TODO(synk): add stochastic dropout via pltpu.prng_random_bits if a
    # training-mode forward is ever needed.

    # Final Linear.
    logits = jnp.dot(pooled, lw_ref[...], preferred_element_type=jnp.float32)
    logits = logits + lb_ref[...]
    logits_ref[...] = logits.astype(logits_ref.dtype)


def _fused_gcn_call(inputs, nb_layers, Gp, Hp, Op):
    """Single-block pallas_call; every operand fits in VMEM at padded sizes."""
    kernel = functools.partial(_gcn_fused_kernel, nb_layers=nb_layers)

    def full_spec(shape):
        return pl.BlockSpec(shape, lambda i: (0,) * len(shape))

    in_specs = [full_spec(a.shape) for a in inputs]
    out_specs = (full_spec((Gp, Op)), full_spec((Gp, Hp)))

    return pl.pallas_call(
        kernel,
        out_shape=(jax.ShapeDtypeStruct((Gp, Op), jnp.float32),
                   jax.ShapeDtypeStruct((Gp, Hp), jnp.float32)),
        grid=(1,),
        in_specs=in_specs,
        out_specs=out_specs,
        compiler_params=pltpu.CompilerParams(
            dimension_semantics=("arbitrary",)),
    )(*inputs)


# ---------------------------------------------------------------------------
# Parameter init (mirrors module shapes; PyG GCNConv bias init = zeros)
# ---------------------------------------------------------------------------
def init_gcn_params(key, in_channels, hidden_channels, out_channels, nb_layers=3):
    conv_w, conv_b = [], []
    dims_in = [in_channels] + [hidden_channels] * (nb_layers - 1)
    for i in range(nb_layers):
        key, sub = jax.random.split(key)
        fan_in, fan_out = dims_in[i], hidden_channels
        limit = jnp.sqrt(6.0 / (fan_in + fan_out))
        conv_w.append(jax.random.uniform(sub, (fan_in, fan_out), jnp.float32,
                                         -limit, limit))
        conv_b.append(jnp.zeros((fan_out,), jnp.float32))
    key, sub_w, sub_b = jax.random.split(key, 3)
    limit = 1.0 / jnp.sqrt(hidden_channels)
    lin_w = jax.random.uniform(sub_w, (hidden_channels, out_channels), jnp.float32,
                               -limit, limit)
    lin_b = jax.random.uniform(sub_b, (out_channels,), jnp.float32, -limit, limit)
    return dict(conv_w=conv_w, conv_b=conv_b, lin_w=lin_w, lin_b=lin_b)


# ---------------------------------------------------------------------------
# Forward pass (glue builds padded operands; all math runs in the fused kernel)
# ---------------------------------------------------------------------------
def gcn_forward(x, edge_index, batch, params, num_graphs):
    x = x.astype(jnp.float32)
    num_nodes, in_channels = x.shape
    nb_layers = len(params["conv_w"])
    hidden = params["conv_w"][0].shape[1]
    out_channels = params["lin_w"].shape[1]

    # Padded (lane-dense) sizes.
    Np = _round_up(num_nodes, 128)      # node dim appears on the lane axis of A / pool
    Cp = _round_up(in_channels, 128)
    Hp = _round_up(hidden, 128)
    Op = _round_up(out_channels, 128)
    Gp = _round_up(num_graphs, 8)

    # --- adjacency with *remaining* self loops (matches PyG gcn_norm) -------
    # edge_index[0] = source j, edge_index[1] = target i  (messages j -> i)
    adj = jnp.zeros((num_nodes, num_nodes), jnp.float32)
    adj = adj.at[edge_index[1], edge_index[0]].add(1.0)
    diag = jnp.diagonal(adj)
    adj = adj + jnp.diag(jnp.where(diag == 0.0, 1.0, 0.0))   # only missing loops
    deg = adj.sum(axis=1)
    dinv = jnp.where(deg > 0, jax.lax.rsqrt(deg), 0.0)

    # Padded operands. A+I entries are small integers -> bf16 is lossless.
    a_p = jnp.zeros((Np, Np), jnp.bfloat16).at[:num_nodes, :num_nodes].set(
        adj.astype(jnp.bfloat16))
    dinv_p = jnp.zeros((Np, 1), jnp.float32).at[:num_nodes, 0].set(dinv)
    x_p = jnp.zeros((Np, Cp), jnp.float32).at[:num_nodes, :in_channels].set(x)

    # --- pooling: raw one-hot + per-graph 1/count (applied inside kernel) ---
    one_hot = (batch[None, :] == jnp.arange(num_graphs)[:, None]).astype(jnp.float32)
    counts = one_hot.sum(axis=1, keepdims=True)
    inv_counts = 1.0 / jnp.maximum(counts, 1.0)
    pool_p = jnp.zeros((Gp, Np), jnp.float32).at[:num_graphs, :num_nodes].set(one_hot)
    invc_p = jnp.zeros((Gp, 1), jnp.float32).at[:num_graphs].set(inv_counts)

    # --- pad weights / biases -----------------------------------------------
    def pad_w(w, rows, cols):
        return jnp.zeros((rows, cols), jnp.float32).at[:w.shape[0], :w.shape[1]].set(w)

    def pad_b(b, cols):
        return jnp.zeros((1, cols), jnp.float32).at[0, :b.shape[0]].set(b)

    conv_inputs = []
    dims_in = [Cp] + [Hp] * (nb_layers - 1)
    for i in range(nb_layers):
        conv_inputs.append(pad_w(params["conv_w"][i], dims_in[i], Hp))
        conv_inputs.append(pad_b(params["conv_b"][i], Hp))
    lw = pad_w(params["lin_w"], Hp, Op)
    lb = pad_b(params["lin_b"], Op)

    inputs = [x_p, a_p, dinv_p, *conv_inputs, pool_p, invc_p, lw, lb]

    logits_p, pooled_p = _fused_gcn_call(inputs, nb_layers, Gp, Hp, Op)

    logits = logits_p[:num_graphs, :out_channels]
    embeddings = pooled_p[:num_graphs, :hidden]
    return logits, embeddings


if __name__ == "__main__":
    in_channels = 8
    hidden_channels = 32
    out_channels = 2
    num_nodes = 16
    num_edges = 24
    num_graphs = 2

    key = jax.random.PRNGKey(0)
    k_x, k_e, k_p = jax.random.split(key, 3)

    x = jax.random.normal(k_x, (num_nodes, in_channels), jnp.float32)
    edge_index = jax.random.randint(k_e, (2, num_edges), 0, num_nodes, jnp.int32)
    batch = jnp.concatenate([jnp.zeros((num_nodes // 2,), jnp.int32),
                             jnp.ones((num_nodes - num_nodes // 2,), jnp.int32)])

    params = init_gcn_params(k_p, in_channels, hidden_channels, out_channels,
                             nb_layers=3)

    logits, embeddings = gcn_forward(x, edge_index, batch, params, num_graphs)
    jax.block_until_ready((logits, embeddings))
    assert logits.shape == (num_graphs, out_channels)
    assert embeddings.shape == (num_graphs, hidden_channels)
    print("KERNEL_OK")
</pallas_src>

<mosaic_0001>
module attributes {stable_mosaic.version = 11 : i64} {
  func.func @_gcn_fused_kernel(%arg0: i32, %arg1: memref<128x128xf32, #tpu.memory_space<vmem>>, %arg2: memref<128x128xbf16, #tpu.memory_space<vmem>>, %arg3: memref<128x1xf32, #tpu.memory_space<vmem>>, %arg4: memref<128x128xf32, #tpu.memory_space<vmem>>, %arg5: memref<1x128xf32, #tpu.memory_space<vmem>>, %arg6: memref<128x128xf32, #tpu.memory_space<vmem>>, %arg7: memref<1x128xf32, #tpu.memory_space<vmem>>, %arg8: memref<128x128xf32, #tpu.memory_space<vmem>>, %arg9: memref<1x128xf32, #tpu.memory_space<vmem>>, %arg10: memref<8x128xf32, #tpu.memory_space<vmem>>, %arg11: memref<8x1xf32, #tpu.memory_space<vmem>>, %arg12: memref<128x128xf32, #tpu.memory_space<vmem>>, %arg13: memref<1x128xf32, #tpu.memory_space<vmem>>, %arg14: memref<8x128xf32, #tpu.memory_space<vmem>>, %arg15: memref<8x128xf32, #tpu.memory_space<vmem>>) attributes {dimension_semantics = [#tpu.dimension_semantics<arbitrary>], iteration_bounds = array<i64: 1>, scalar_prefetch = 0 : i64, scratch_operands = 0 : i64, tpu.core_type = #tpu.core_type<tc>, window_params = [{pipeline_mode = #tpu.pipeline_mode<synchronous>, transform_indices = @transform_0, window_bounds = array<i64: 128, 128>}, {pipeline_mode = #tpu.pipeline_mode<synchronous>, transform_indices = @transform_1, window_bounds = array<i64: 128, 128>}, {pipeline_mode = #tpu.pipeline_mode<synchronous>, transform_indices = @transform_2, window_bounds = array<i64: 128, 1>}, {pipeline_mode = #tpu.pipeline_mode<synchronous>, transform_indices = @transform_3, window_bounds = array<i64: 128, 128>}, {pipeline_mode = #tpu.pipeline_mode<synchronous>, transform_indices = @transform_4, window_bounds = array<i64: 1, 128>}, {pipeline_mode = #tpu.pipeline_mode<synchronous>, transform_indices = @transform_5, window_bounds = array<i64: 128, 128>}, {pipeline_mode = #tpu.pipeline_mode<synchronous>, transform_indices = @transform_6, window_bounds = array<i64: 1, 128>}, {pipeline_mode = #tpu.pipeline_mode<synchronous>, transform_indices = @transform_7, window_bounds = array<i64: 128, 128>}, {pipeline_mode = #tpu.pipeline_mode<synchronous>, transform_indices = @transform_8, window_bounds = array<i64: 1, 128>}, {pipeline_mode = #tpu.pipeline_mode<synchronous>, transform_indices = @transform_9, window_bounds = array<i64: 8, 128>}, {pipeline_mode = #tpu.pipeline_mode<synchronous>, transform_indices = @transform_10, window_bounds = array<i64: 8, 1>}, {pipeline_mode = #tpu.pipeline_mode<synchronous>, transform_indices = @transform_11, window_bounds = array<i64: 128, 128>}, {pipeline_mode = #tpu.pipeline_mode<synchronous>, transform_indices = @transform_12, window_bounds = array<i64: 1, 128>}, {pipeline_mode = #tpu.pipeline_mode<synchronous>, transform_indices = @transform_13, window_bounds = array<i64: 8, 128>}, {pipeline_mode = #tpu.pipeline_mode<synchronous>, transform_indices = @transform_14, window_bounds = array<i64: 8, 128>}]} {
    %c0 = arith.constant 0 : index
    %c0_0 = arith.constant 0 : index
    %0 = vector.load %arg3[%c0, %c0_0] : memref<128x1xf32, #tpu.memory_space<vmem>>, vector<128x1xf32>
    %c0_1 = arith.constant 0 : index
    %c0_2 = arith.constant 0 : index
    %1 = vector.load %arg2[%c0_1, %c0_2] : memref<128x128xbf16, #tpu.memory_space<vmem>>, vector<128x128xbf16>
    %c0_3 = arith.constant 0 : index
    %c0_4 = arith.constant 0 : index
    %2 = vector.load %arg1[%c0_3, %c0_4] : memref<128x128xf32, #tpu.memory_space<vmem>>, vector<128x128xf32>
    %c0_5 = arith.constant 0 : index
    %c0_6 = arith.constant 0 : index
    %3 = vector.load %arg4[%c0_5, %c0_6] : memref<128x128xf32, #tpu.memory_space<vmem>>, vector<128x128xf32>
    %cst = arith.constant dense<0.000000e+00> : vector<128x128xf32>
    %4 = tpu.matmul %2, %3, %cst {dimension_numbers = #tpu.dot_dimension_numbers<[1], [0], [0], [1], [0, 0, 1, 1], [], []>} : vector<128x128xf32>, vector<128x128xf32>, vector<128x128xf32> -> vector<128x128xf32>
    %5 = vector.broadcast %0 : vector<128x1xf32> to vector<128x128xf32>
    %6 = arith.mulf %4, %5 : vector<128x128xf32>
    %7 = arith.truncf %6 : vector<128x128xf32> to vector<128x128xbf16>
    %cst_7 = arith.constant dense<0.000000e+00> : vector<128x128xf32>
    %8 = tpu.matmul %1, %7, %cst_7 {dimension_numbers = #tpu.dot_dimension_numbers<[1], [0], [0], [1], [0, 0, 1, 1], [], []>} : vector<128x128xbf16>, vector<128x128xbf16>, vector<128x128xf32> -> vector<128x128xf32>
    %9 = vector.broadcast %0 : vector<128x1xf32> to vector<128x128xf32>
    %10 = arith.mulf %8, %9 : vector<128x128xf32>
    %c0_8 = arith.constant 0 : index
    %c0_9 = arith.constant 0 : index
    %11 = vector.load %arg5[%c0_8, %c0_9] : memref<1x128xf32, #tpu.memory_space<vmem>>, vector<1x128xf32>
    %12 = vector.broadcast %11 : vector<1x128xf32> to vector<128x128xf32>
    %13 = arith.addf %10, %12 : vector<128x128xf32>
    %cst_10 = arith.constant 0.000000e+00 : f32
    %14 = vector.broadcast %cst_10 : f32 to vector<128x128xf32>
    %15 = arith.maximumf %13, %14 : vector<128x128xf32>
    %c0_11 = arith.constant 0 : index
    %c0_12 = arith.constant 0 : index
    %16 = vector.load %arg6[%c0_11, %c0_12] : memref<128x128xf32, #tpu.memory_space<vmem>>, vector<128x128xf32>
    %cst_13 = arith.constant dense<0.000000e+00> : vector<128x128xf32>
    %17 = tpu.matmul %15, %16, %cst_13 {dimension_numbers = #tpu.dot_dimension_numbers<[1], [0], [0], [1], [0, 0, 1, 1], [], []>} : vector<128x128xf32>, vector<128x128xf32>, vector<128x128xf32> -> vector<128x128xf32>
    %18 = vector.broadcast %0 : vector<128x1xf32> to vector<128x128xf32>
    %19 = arith.mulf %17, %18 : vector<128x128xf32>
    %20 = arith.truncf %19 : vector<128x128xf32> to vector<128x128xbf16>
    %cst_14 = arith.constant dense<0.000000e+00> : vector<128x128xf32>
    %21 = tpu.matmul %1, %20, %cst_14 {dimension_numbers = #tpu.dot_dimension_numbers<[1], [0], [0], [1], [0, 0, 1, 1], [], []>} : vector<128x128xbf16>, vector<128x128xbf16>, vector<128x128xf32> -> vector<128x128xf32>
    %22 = vector.broadcast %0 : vector<128x1xf32> to vector<128x128xf32>
    %23 = arith.mulf %21, %22 : vector<128x128xf32>
    %c0_15 = arith.constant 0 : index
    %c0_16 = arith.constant 0 : index
    %24 = vector.load %arg7[%c0_15, %c0_16] : memref<1x128xf32, #tpu.memory_space<vmem>>, vector<1x128xf32>
    %25 = vector.broadcast %24 : vector<1x128xf32> to vector<128x128xf32>
    %26 = arith.addf %23, %25 : vector<128x128xf32>
    %cst_17 = arith.constant 0.000000e+00 : f32
    %27 = vector.broadcast %cst_17 : f32 to vector<128x128xf32>
    %28 = arith.maximumf %26, %27 : vector<128x128xf32>
    %c0_18 = arith.constant 0 : index
    %c0_19 = arith.constant 0 : index
    %29 = vector.load %arg8[%c0_18, %c0_19] : memref<128x128xf32, #tpu.memory_space<vmem>>, vector<128x128xf32>
    %cst_20 = arith.constant dense<0.000000e+00> : vector<128x128xf32>
    %30 = tpu.matmul %28, %29, %cst_20 {dimension_numbers = #tpu.dot_dimension_numbers<[1], [0], [0], [1], [0, 0, 1, 1], [], []>} : vector<128x128xf32>, vector<128x128xf32>, vector<128x128xf32> -> vector<128x128xf32>
    %31 = vector.broadcast %0 : vector<128x1xf32> to vector<128x128xf32>
    %32 = arith.mulf %30, %31 : vector<128x128xf32>
    %33 = arith.truncf %32 : vector<128x128xf32> to vector<128x128xbf16>
    %cst_21 = arith.constant dense<0.000000e+00> : vector<128x128xf32>
    %34 = tpu.matmul %1, %33, %cst_21 {dimension_numbers = #tpu.dot_dimension_numbers<[1], [0], [0], [1], [0, 0, 1, 1], [], []>} : vector<128x128xbf16>, vector<128x128xbf16>, vector<128x128xf32> -> vector<128x128xf32>
    %35 = vector.broadcast %0 : vector<128x1xf32> to vector<128x128xf32>
    %36 = arith.mulf %34, %35 : vector<128x128xf32>
    %c0_22 = arith.constant 0 : index
    %c0_23 = arith.constant 0 : index
    %37 = vector.load %arg9[%c0_22, %c0_23] : memref<1x128xf32, #tpu.memory_space<vmem>>, vector<1x128xf32>
    %38 = vector.broadcast %37 : vector<1x128xf32> to vector<128x128xf32>
    %39 = arith.addf %36, %38 : vector<128x128xf32>
    %c0_24 = arith.constant 0 : index
    %c0_25 = arith.constant 0 : index
    %40 = vector.load %arg10[%c0_24, %c0_25] : memref<8x128xf32, #tpu.memory_space<vmem>>, vector<8x128xf32>
    %cst_26 = arith.constant dense<0.000000e+00> : vector<8x128xf32>
    %41 = tpu.matmul %40, %39, %cst_26 {dimension_numbers = #tpu.dot_dimension_numbers<[1], [0], [0], [1], [0, 0, 1, 1], [], []>} : vector<8x128xf32>, vector<128x128xf32>, vector<8x128xf32> -> vector<8x128xf32>
    %c0_27 = arith.constant 0 : index
    %c0_28 = arith.constant 0 : index
    %42 = vector.load %arg11[%c0_27, %c0_28] : memref<8x1xf32, #tpu.memory_space<vmem>>, vector<8x1xf32>
    %43 = vector.broadcast %42 : vector<8x1xf32> to vector<8x128xf32>
    %44 = arith.mulf %41, %43 : vector<8x128xf32>
    %c0_29 = arith.constant 0 : index
    %c0_30 = arith.constant 0 : index
    %45 = vector.load %arg15[%c0_29, %c0_30] : memref<8x128xf32, #tpu.memory_space<vmem>>, vector<8x128xf32>
    tpu.vector_store %arg15[%c0_29, %c0_30], %44 {strides = array<i32>} : memref<8x128xf32, #tpu.memory_space<vmem>>, vector<8x128xf32>,
    %c0_31 = arith.constant 0 : index
    %c0_32 = arith.constant 0 : index
    %46 = vector.load %arg12[%c0_31, %c0_32] : memref<128x128xf32, #tpu.memory_space<vmem>>, vector<128x128xf32>
    %cst_33 = arith.constant dense<0.000000e+00> : vector<8x128xf32>
    %47 = tpu.matmul %44, %46, %cst_33 {dimension_numbers = #tpu.dot_dimension_numbers<[1], [0], [0], [1], [0, 0, 1, 1], [], []>} : vector<8x128xf32>, vector<128x128xf32>, vector<8x128xf32> -> vector<8x128xf32>
    %c0_34 = arith.constant 0 : index
    %c0_35 = arith.constant 0 : index
    %48 = vector.load %arg13[%c0_34, %c0_35] : memref<1x128xf32, #tpu.memory_space<vmem>>, vector<1x128xf32>
    %49 = vector.broadcast %48 : vector<1x128xf32> to vector<8x128xf32>
    %50 = arith.addf %47, %49 : vector<8x128xf32>
    %c0_36 = arith.constant 0 : index
    %c0_37 = arith.constant 0 : index
    %51 = vector.load %arg14[%c0_36, %c0_37] : memref<8x128xf32, #tpu.memory_space<vmem>>, vector<8x128xf32>
    tpu.vector_store %arg14[%c0_36, %c0_37], %50 {strides = array<i32>} : memref<8x128xf32, #tpu.memory_space<vmem>>, vector<8x128xf32>,
    return
  }
  func.func @transform_0(%arg0: i32) -> (i32, i32) {
    %c0_i32 = arith.constant 0 : i32
    %c0_i32_0 = arith.constant 0 : i32
    %c0_i32_1 = arith.constant 0 : i32
    return %c0_i32, %c0_i32_0 : i32, i32
  }
  func.func @transform_1(%arg0: i32) -> (i32, i32) {
    %c0_i32 = arith.constant 0 : i32
    %c0_i32_0 = arith.constant 0 : i32
    %c0_i32_1 = arith.constant 0 : i32
    return %c0_i32, %c0_i32_0 : i32, i32
  }
  func.func @transform_2(%arg0: i32) -> (i32, i32) {
    %c0_i32 = arith.constant 0 : i32
    %c0_i32_0 = arith.constant 0 : i32
    %c0_i32_1 = arith.constant 0 : i32
    return %c0_i32, %c0_i32_0 : i32, i32
  }
  func.func @transform_3(%arg0: i32) -> (i32, i32) {
    %c0_i32 = arith.constant 0 : i32
    %c0_i32_0 = arith.constant 0 : i32
    %c0_i32_1 = arith.constant 0 : i32
    return %c0_i32, %c0_i32_0 : i32, i32
  }
  func.func @transform_4(%arg0: i32) -> (i32, i32) {
    %c0_i32 = arith.constant 0 : i32
    %c0_i32_0 = arith.constant 0 : i32
    %c0_i32_1 = arith.constant 0 : i32
    return %c0_i32, %c0_i32_0 : i32, i32
  }
  func.func @transform_5(%arg0: i32) -> (i32, i32) {
    %c0_i32 = arith.constant 0 : i32
    %c0_i32_0 = arith.constant 0 : i32
    %c0_i32_1 = arith.constant 0 : i32
    return %c0_i32, %c0_i32_0 : i32, i32
  }
  func.func @transform_6(%arg0: i32) -> (i32, i32) {
    %c0_i32 = arith.constant 0 : i32
    %c0_i32_0 = arith.constant 0 : i32
    %c0_i32_1 = arith.constant 0 : i32
    return %c0_i32, %c0_i32_0 : i32, i32
  }
  func.func @transform_7(%arg0: i32) -> (i32, i32) {
    %c0_i32 = arith.constant 0 : i32
    %c0_i32_0 = arith.constant 0 : i32
    %c0_i32_1 = arith.constant 0 : i32
    return %c0_i32, %c0_i32_0 : i32, i32
  }
  func.func @transform_8(%arg0: i32) -> (i32, i32) {
    %c0_i32 = arith.constant 0 : i32
    %c0_i32_0 = arith.constant 0 : i32
    %c0_i32_1 = arith.constant 0 : i32
    return %c0_i32, %c0_i32_0 : i32, i32
  }
  func.func @transform_9(%arg0: i32) -> (i32, i32) {
    %c0_i32 = arith.constant 0 : i32
    %c0_i32_0 = arith.constant 0 : i32
    %c0_i32_1 = arith.constant 0 : i32
    return %c0_i32, %c0_i32_0 : i32, i32
  }
  func.func @transform_10(%arg0: i32) -> (i32, i32) {
    %c0_i32 = arith.constant 0 : i32
    %c0_i32_0 = arith.constant 0 : i32
    %c0_i32_1 = arith.constant 0 : i32
    return %c0_i32, %c0_i32_0 : i32, i32
  }
  func.func @transform_11(%arg0: i32) -> (i32, i32) {
    %c0_i32 = arith.constant 0 : i32
    %c0_i32_0 = arith.constant 0 : i32
    %c0_i32_1 = arith.constant 0 : i32
    return %c0_i32, %c0_i32_0 : i32, i32
  }
  func.func @transform_12(%arg0: i32) -> (i32, i32) {
    %c0_i32 = arith.constant 0 : i32
    %c0_i32_0 = arith.constant 0 : i32
    %c0_i32_1 = arith.constant 0 : i32
    return %c0_i32, %c0_i32_0 : i32, i32
  }
  func.func @transform_13(%arg0: i32) -> (i32, i32) {
    %c0_i32 = arith.constant 0 : i32
    %c0_i32_0 = arith.constant 0 : i32
    %c0_i32_1 = arith.constant 0 : i32
    return %c0_i32, %c0_i32_0 : i32, i32
  }
  func.func @transform_14(%arg0: i32) -> (i32, i32) {
    %c0_i32 = arith.constant 0 : i32
    %c0_i32_0 = arith.constant 0 : i32
    %c0_i32_1 = arith.constant 0 : i32
    return %c0_i32, %c0_i32_0 : i32, i32
  }
}

</mosaic_0001>

<bundles_post_ra>
// kernel: tpu_custom_call.1
= control target key start
LH: loop header
LB: loop body
LE: loop exit
PB: predicated region body
PF: predicated region fallthrough
CT: control target
= control target key end

     0   :  { %20 = vsyncpa [#allocation3], 0  ;;  %s2676_s0 = inlined_call_operand.vmem [shape: f32[128,128], index: 0, kind: input, shape index: {}]   ;;  %s2677_s1 = inlined_call_operand.hbm [shape: bf16[128,128], index: 1, kind: input, shape index: {}]   ;;  %s2678_s2 = inlined_call_operand.vmem [shape: f32[128,1], index: 2, kind: input, shape index: {}]   ;;  %s2679_s3 = inlined_call_operand.hbm [shape: f32[128,128], index: 3, kind: input, shape index: {}]   ;;  %s2680_s4 = inlined_call_operand.vmem [shape: f32[1,128], index: 4, kind: input, shape index: {}]   ;;  %s2681_s5 = inlined_call_operand.hbm [shape: f32[128,128], index: 5, kind: input, shape index: {}]   ;;  %s2682_s6 = inlined_call_operand.vmem [shape: f32[1,128], index: 6, kind: input, shape index: {}]   ;;  %s2683_s7 = inlined_call_operand.hbm [shape: f32[128,128], index: 7, kind: input, shape index: {}]   ;;  %s2684_s8 = inlined_call_operand.vmem [shape: f32[1,128], index: 8, kind: input, shape index: {}]   ;;  %s2685_s9 = inlined_call_operand.vmem [shape: f32[8,128], index: 9, kind: input, shape index: {}]   ;;  %s2686_s10 = inlined_call_operand.vmem [shape: f32[8,1], index: 10, kind: input, shape index: {}]   ;;  %s2687_s11 = inlined_call_operand.hbm [shape: f32[128,128], index: 11, kind: input, shape index: {}]   ;;  %s2688_s12 = inlined_call_operand.vmem [shape: f32[1,128], index: 12, kind: input, shape index: {}]   ;;  %s2689_s13 = inlined_call_operand.hbm [shape: f32[8,128], index: 13, kind: output, shape index: {0}]   ;;  %s2690_s14 = inlined_call_operand.hbm [shape: f32[8,128], index: 14, kind: output, shape index: {1}]  }
   0x1   :  { %21 = vsyncpa [#allocation6], 0 }
   0x2   :  { %22 = vsyncpa [#allocation9], 0 }
   0x3   :  { %23 = vsyncpa [#allocation4], 0 }
   0x4   :  { %24 = vsyncpa [#allocation13], 0  ;;  %s2190_s29 = smov [#allocation5]  }
   0x5   :  { %s46_s30 = sshll.u32 %s2190_s29, 4  ;;  %s47_s30 = int_to_ptr.vmem [resolvable:$true] %s46_s30 }
   0x6   :  { %s2048_s15 = scalar_lea.vmem %s47_s30, 2048  ;;  %p2053_p1 = scmp.lt.s32.totalorder %s47_s30, %s47_s30 }
   0x7   :  { %p2049_p0 = scmp.ne.s32.totalorder %s47_s30, %s2048_s15  ;;  %p2054_p2 = scmp.lt.s32.totalorder %s2048_s15, %s2048_s15 }
   0x9   :  { %p2055_p3 = por %p2054_p2, %p2053_p1 }
   0xb   :  { %p2056_p4 = pnand %p2055_p3, %p2049_p0 }
   0xd   :  { %2059 = shalt.err (!%p2056_p4)
}
   0xe   :  { %s2191_s16 = smov 128   ;;  %s2192_s17 = smov 8  }
   0xf   :  { %52 = dma.hbm_to_vmem [thread:$0]  %s2679_s3, 2048, %s47_s30, [#allocation6], %s2191_s16, %s2191_s16, %s2192_s17  }
  0x10   :  { %s2193_s20 = smov [#allocation8]   ;;  %s2194_s22 = smov [#allocation2]  }
  0x11   :  { %s74_s21 = sshll.u32 %s2193_s20, 4  ;;  %s32_s23 = sshll.u32 %s2194_s22, 4  ;;  %s75_s21 = int_to_ptr.vmem [resolvable:$true] %s74_s21  ;;  %s33_s23 = int_to_ptr.vmem [resolvable:$true] %s32_s23 }
  0x12   :  { %s2068_s24 = scalar_lea.vmem %s75_s21, 2048  ;;  %p2073_p6 = scmp.lt.s32.totalorder %s75_s21, %s75_s21 }
  0x13   :  { %p2069_p5 = scmp.ne.s32.totalorder %s75_s21, %s2068_s24  ;;  %p2074_p7 = scmp.lt.s32.totalorder %s2068_s24, %s2068_s24 }
  0x15   :  { %p2075_p8 = por %p2074_p7, %p2073_p6 }
  0x17   :  { %p2076_p9 = pnand %p2075_p8, %p2069_p5 }
  0x19   :  { %2079 = shalt.err (!%p2076_p9)
}
  0x1a   :  { %80 = dma.hbm_to_vmem [thread:$0]  %s2683_s7, 2048, %s75_s21, [#allocation9], %s2191_s16, %s2191_s16, %s2192_s17  }
  0x1b   :  { %s2088_s3 = scalar_lea.vmem %s33_s23, 1024  ;;  %p2093_p11 = scmp.lt.s32.totalorder %s33_s23, %s33_s23 }
  0x1c   :  { %p2089_p10 = scmp.ne.s32.totalorder %s33_s23, %s2088_s3  ;;  %p2094_p12 = scmp.lt.s32.totalorder %s2088_s3, %s2088_s3 }
  0x1e   :  { %p2095_p13 = por %p2094_p12, %p2093_p11 }
  0x20   :  { %p2096_p0 = pnand %p2095_p13, %p2089_p10 }
  0x22   :  { %2099 = shalt.err (!%p2096_p0)
}
  0x23   :  { %s2195_s27 = smov 64   ;;  %s2196_s28 = smov 4  }
  0x24   :  { %38 = dma.hbm_to_vmem [thread:$0]  %s2677_s1, 1024, %s33_s23, [#allocation3], %s2195_s27, %s2195_s27, %s2196_s28  }
  0x25   :  { %s2197_s15 = smov [#allocation7]   ;;  %s2198_s19 = smov [#allocation10]  }
  0x26   :  { %s60_s18 = sshll.u32 %s2197_s15, 4  ;;  %s92_s20 = sshll.u32 %s2198_s19, 4  ;;  %s61_s18 = int_to_ptr.vmem [resolvable:$true] %s60_s18  ;;  %s93_s20 = int_to_ptr.vmem [resolvable:$true] %s92_s20 }
  0x27   :  { %s2108_s7 = scalar_lea.vmem %s61_s18, 2048  ;;  %p2113_p2 = scmp.lt.s32.totalorder %s61_s18, %s61_s18 }
  0x28   :  { %p2109_p1 = scmp.ne.s32.totalorder %s61_s18, %s2108_s7  ;;  %p2114_p3 = scmp.lt.s32.totalorder %s2108_s7, %s2108_s7 }
  0x2a   :  { %p2115_p4 = por %p2114_p3, %p2113_p2 }
  0x2c   :  { %p2116_p5 = pnand %p2115_p4, %p2109_p1 }
  0x2e   :  { %2119 = shalt.err (!%p2116_p5)
}
  0x2f   :  { %66 = dma.hbm_to_vmem [thread:$0]  %s2681_s5, 2048, %s61_s18, [#allocation6], %s2191_s16, %s2191_s16, %s2192_s17  }
  0x30   :  { %s2128_s1 = scalar_lea.vmem %s93_s20, 2048  ;;  %p2133_p7 = scmp.lt.s32.totalorder %s93_s20, %s93_s20 }
  0x31   :  { %p2129_p6 = scmp.ne.s32.totalorder %s93_s20, %s2128_s1  ;;  %p2134_p8 = scmp.lt.s32.totalorder %s2128_s1, %s2128_s1 }
  0x33   :  { %p2135_p9 = por %p2134_p8, %p2133_p7 }
  0x35   :  { %p2136_p10 = pnand %p2135_p9, %p2129_p6 }
  0x37   :  { %2139 = shalt.err (!%p2136_p10)
}
  0x38   :  { %98 = dma.hbm_to_vmem [thread:$0]  %s2687_s11, 2048, %s93_s20, [#allocation9], %s2191_s16, %s2191_s16, %s2192_s17  }
  0x39   :  { %2180 = dma.done.wait [#allocation3], 1024  }
  0x3a   :  { %2181 = vsyncadd [#allocation3], 4294966272 }
  0x3b   :  { %2182 = dma.done.wait [#allocation6], 4096  }
  0x3c   :  { %2183 = vsyncadd [#allocation6], 4294963200 }
  0x3d   :  { %2184 = dma.done.wait [#allocation9], 4096  }
  0x3e   :  { %2185 = vsyncadd [#allocation9], 4294963200  ;;  %v2199_v0 = vmov 0   ;;  %v180_v1 = vld [vmem:[#allocation5 + $0x78] sm:$0xff]  ;;  %v179_v2 = vld [vmem:[#allocation5 + $0x70] sm:$0xff]  ;;  %vm2201_vm0 = vmmov 0  }
  0x3f   :  { %2031 = vset.pattern.permute.xlu1 %v2199_v0  ;;  %2030 = vset.pattern.permute.xlu0 %v2199_v0  ;;  %v178_v3 = vld [vmem:[#allocation5 + $0x68] sm:$0xff]  ;;  %v177_v4 = vld [vmem:[#allocation5 + $0x60] sm:$0xff]  ;;  %v176_v6 = vld [vmem:[#allocation5 + $0x58] sm:$0xff]  ;;  %s2202_s26 = smov [#allocation12]  }
  0x40   :  { %1682 = vmatprep.subr.mxu0 %v180_v1  ;;  %v149_v5 = vld [vmem:[%s2676_s0] sm:$0xff]  ;;  %v175_v7 = vld [vmem:[#allocation5 + $0x50] sm:$0xff]  ;;  %v174_v8 = vld [vmem:[#allocation5 + $0x48] sm:$0xff]  ;;  %s1477_s3 = sshll.u32 %s2202_s26, 4  ;;  %s1478_s3 = int_to_ptr.vmem [resolvable:$true] %s1477_s3 }
  0x41   :  { %1683 = vmatpush3.msra.mxu0 %v180_v1  ;;  %1714 = vmatprep.mubr.f32.mxu0 %v149_v5  ;;  %v129_v9 = vld [vmem:[%s2678_s2 + $0x60] sm:$0xff]  ;;  %v131_v10 = vld [vmem:[%s2678_s2 + $0x70] sm:$0xff]  ;;  %v130_v12 = vld [vmem:[%s2678_s2 + $0x68] sm:$0xff]  ;;  %p2145_p12 = scmp.lt.s32.totalorder %s1478_s3, %s1478_s3 }
  0x42   :  { %1684 = vmatprep.subr.mxu0 %v179_v2  ;;  %388 = vperm.xlu1 %2031, %v129_v9   ;;  %v173_v11 = vld [vmem:[#allocation5 + $0x40] sm:$0xff]  ;;  %v132_v13 = vld [vmem:[%s2678_s2 + $0x78] sm:$0xff]  ;;  %v171_v15 = vld [vmem:[#allocation5 + $0x30] sm:$0xff] }
  0x43   :  { %1685 = vmatpush3.msra.mxu0 %v179_v2  ;;  %398 = vperm.xlu0 %2030, %v131_v10   ;;  %v172_v14 = vld [vmem:[#allocation5 + $0x38] sm:$0xff]  ;;  %v170_v17 = vld [vmem:[#allocation5 + $0x28] sm:$0xff]  ;;  %v127_v18 = vld [vmem:[%s2678_s2 + $0x50] sm:$0xff] }
  0x44   :  { %1686 = vmatprep.subr.mxu0 %v178_v3  ;;  %v128_v16 = vld [vmem:[%s2678_s2 + $0x58] sm:$0xff]  ;;  %v169_v19 = vld [vmem:[#allocation5 + $0x20] sm:$0xff]  ;;  %v126_v20 = vld [vmem:[%s2678_s2 + $0x48] sm:$0xff] }
  0x45   :  { %1687 = vmatpush3.msra.mxu0 %v178_v3  ;;  %v125_v21 = vld [vmem:[%s2678_s2 + $0x40] sm:$0xff]  ;;  %v168_v22 = vld [vmem:[#allocation5 + $0x18] sm:$0xff]  ;;  %v167_v23 = vld [vmem:[#allocation5 + $0x10] sm:$0xff] }
  0x46   :  { %1688 = vmatprep.subr.mxu0 %v177_v4  ;;  %393 = vperm.xlu1 %2031, %v130_v12   ;;  %v124_v24 = vld [vmem:[%s2678_s2 + $0x38] sm:$0xff]  ;;  %v123_v25 = vld [vmem:[%s2678_s2 + $0x30] sm:$0xff]  ;;  %v166_v26 = vld [vmem:[#allocation5 + $0x8] sm:$0xff] }
  0x47   :  { %1689 = vmatpush3.msra.mxu0 %v177_v4  ;;  %403 = vperm.xlu0 %2030, %v132_v13   ;;  %v165_v27 = vld [vmem:[#allocation5] sm:$0xff]  ;;  %v122_v28 = vld [vmem:[%s2678_s2 + $0x28] sm:$0xff]  ;;  %v151_v31 = vld [vmem:[%s2676_s0 + $0x10] sm:$0xff] }
  0x48   :  { %1690 = vmatprep.subr.mxu0 %v176_v6  ;;  %v121_v29 = vld [vmem:[%s2678_s2 + $0x20] sm:$0xff]  ;;  %v150_v30 = vld [vmem:[%s2676_s0 + $0x8] sm:$0xff]  ;;  %v120_v32 = vld [vmem:[%s2678_s2 + $0x18] sm:$0xff] }
  0x49   :  { %1691 = vmatpush3.msra.mxu0 %v176_v6  ;;  %v119_v33 = vld [vmem:[%s2678_s2 + $0x10] sm:$0xff]  ;;  %v152_v34 = vld [vmem:[%s2676_s0 + $0x18] sm:$0xff]  ;;  %v153_v35 = vld [vmem:[%s2676_s0 + $0x20] sm:$0xff] }
  0x4a   :  { %1692 = vmatprep.subr.mxu0 %v175_v7  ;;  %383 = vperm.xlu1 %2031, %v128_v16   ;;  %v118_v36 = vld [vmem:[%s2678_s2 + $0x8] sm:$0xff]  ;;  %v117_v37 = vld [vmem:[%s2678_s2] sm:$0xff]  ;;  %v155_v39 = vld [vmem:[%s2676_s0 + $0x30] sm:$0xff] }
  0x4b   :  { %1693 = vmatpush3.msra.mxu0 %v175_v7  ;;  %378 = vperm.xlu0 %2030, %v127_v18   ;;  %v154_v38 = vld [vmem:[%s2676_s0 + $0x28] sm:$0xff]  ;;  %v1359_v40 = vld [vmem:[%s2686_s10] sm:$0xff]  ;;  %v156_v41 = vld [vmem:[%s2676_s0 + $0x38] sm:$0xff] }
  0x4c   :  { %1694 = vmatprep.subr.mxu0 %v174_v8  ;;  %v157_v42 = vld [vmem:[%s2676_s0 + $0x40] sm:$0xff]  ;;  %v158_v43 = vld [vmem:[%s2676_s0 + $0x48] sm:$0xff]  ;;  %v159_v44 = vld [vmem:[%s2676_s0 + $0x50] sm:$0xff] }
  0x4d   :  { %1695 = vmatpush3.msra.mxu0 %v174_v8  ;;  %v160_v45 = vld [vmem:[%s2676_s0 + $0x58] sm:$0xff]  ;;  %v161_v46 = vld [vmem:[%s2676_s0 + $0x60] sm:$0xff]  ;;  %v162_v47 = vld [vmem:[%s2676_s0 + $0x68] sm:$0xff] }
  0x4e   :  { %1696 = vmatprep.subr.mxu0 %v173_v11  ;;  %373 = vperm.xlu1 %2031, %v126_v20   ;;  %v163_v48 = vld [vmem:[%s2676_s0 + $0x70] sm:$0xff]  ;;  %v164_v49 = vld [vmem:[%s2676_s0 + $0x78] sm:$0xff]  ;;  %v2405_v50 = vld [vmem:[#allocation2] sm:$0xff]  }
  0x4f   :  { %1697 = vmatpush3.msra.mxu0 %v173_v11  ;;  %368 = vperm.xlu0 %2030, %v125_v21   ;;  %v645_v51 = vld [vmem:[#allocation7 + $0x78] sm:$0xff]  ;;  %v644_v52 = vld [vmem:[#allocation7 + $0x70] sm:$0xff]  ;;  %v643_v53 = vld [vmem:[#allocation7 + $0x68] sm:$0xff] }
  0x50   :  { %1698 = vmatprep.subr.mxu0 %v172_v14  ;;  %1754 = vmatprep.mubr.bf16.mxu1 %v2405_v50  ;;  %v642_v54 = vld [vmem:[#allocation7 + $0x60] sm:$0xff]  ;;  %v641_v55 = vld [vmem:[#allocation7 + $0x58] sm:$0xff]  ;;  %v640_v56 = vld [vmem:[#allocation7 + $0x50] sm:$0xff] }
  0x51   :  { %1699 = vmatpush3.msra.mxu0 %v172_v14  ;;  %v639_v57 = vld [vmem:[#allocation7 + $0x48] sm:$0xff]  ;;  %v638_v58 = vld [vmem:[#allocation7 + $0x40] sm:$0xff]  ;;  %v637_v59 = vld [vmem:[#allocation7 + $0x38] sm:$0xff] }
  0x52   :  { %1700 = vmatprep.subr.mxu0 %v171_v15  ;;  %363 = vperm.xlu1 %2031, %v124_v24   ;;  %v636_v60 = vld [vmem:[#allocation7 + $0x30] sm:$0xff] }
  0x53   :  { %1701 = vmatpush3.msra.mxu0 %v171_v15  ;;  %358 = vperm.xlu0 %2030, %v123_v25  }
  0x54   :  { %1702 = vmatprep.subr.mxu0 %v170_v17 }
  0x55   :  { %1703 = vmatpush3.msra.mxu0 %v170_v17 }
  0x56   :  { %1704 = vmatprep.subr.mxu0 %v169_v19  ;;  %353 = vperm.xlu1 %2031, %v122_v28  }
  0x57   :  { %1705 = vmatpush3.msra.mxu0 %v169_v19  ;;  %348 = vperm.xlu0 %2030, %v121_v29  }
  0x58   :  { %1706 = vmatprep.subr.mxu0 %v168_v22 }
  0x59   :  { %1707 = vmatpush3.msra.mxu0 %v168_v22 }
  0x5a   :  { %1708 = vmatprep.subr.mxu0 %v167_v23  ;;  %343 = vperm.xlu1 %2031, %v120_v32  }
  0x5b   :  { %1709 = vmatpush3.msra.mxu0 %v167_v23  ;;  %338 = vperm.xlu0 %2030, %v119_v33  }
  0x5c   :  { %1710 = vmatprep.subr.mxu0 %v166_v26 }
  0x5d   :  { %1711 = vmatpush3.msra.mxu0 %v166_v26 }
  0x5e   :  { %1712 = vmatprep.subr.mxu0 %v165_v27  ;;  %333 = vperm.xlu1 %2031, %v118_v36  }
  0x5f   :  { %1713 = vmatpush3.msra.mxu0 %v165_v27  ;;  %328 = vperm.xlu0 %2030, %v117_v37  }
  0x60   :  { %1715 = vmatmul.mubr.f32.vlgmr.msra.gmra.mxu0 %v150_v30  ;;  %1770 = vmatprep.subr.mxu0 %v645_v51 }
  0x61   :  { %1717 = vmatprep.mubr.f32.mxu0 %v151_v31  ;;  %1771 = vmatpush3.msra.mxu0 %v645_v51 }
  0x62   :  { %1772 = vmatprep.subr.mxu0 %v644_v52 }
  0x63   :  { %1362 = vperm.xlu0 %2030, %v1359_v40   ;;  %1773 = vmatpush3.msra.mxu0 %v644_v52 }
  0x64   :  { %1718 = vmatmul.mubr.f32.gmra.mxu0 %v152_v34  ;;  %1774 = vmatprep.subr.mxu0 %v643_v53 }
  0x65   :  { %1720 = vmatprep.mubr.f32.mxu0 %v153_v35  ;;  %1775 = vmatpush3.msra.mxu0 %v643_v53 }
  0x66   :  { %1776 = vmatprep.subr.mxu0 %v642_v54 }
  0x67   :  { %1777 = vmatpush3.msra.mxu0 %v642_v54  ;;  %v2462_v54 = vld [vmem:[#allocation2 + $0x8] sm:$0xff]  }
  0x68   :  { %1721 = vmatmul.mubr.f32.gmra.mxu0 %v154_v38  ;;  %1778 = vmatprep.subr.mxu0 %v641_v55 }
  0x69   :  { %1723 = vmatprep.mubr.f32.mxu0 %v155_v39  ;;  %1779 = vmatpush3.msra.mxu0 %v641_v55  ;;  %v2464_v55 = vld [vmem:[#allocation2 + $0x10] sm:$0xff]  }
  0x6a   :  { %1780 = vmatprep.subr.mxu0 %v640_v56 }
  0x6b   :  { %1781 = vmatpush3.msra.mxu0 %v640_v56  ;;  %v2468_v56 = vld [vmem:[#allocation2 + $0x18] sm:$0xff]  }
  0x6c   :  { %1724 = vmatmul.mubr.f32.gmra.mxu0 %v156_v41  ;;  %1782 = vmatprep.subr.mxu0 %v639_v57 }
  0x6d   :  { %1726 = vmatprep.mubr.f32.mxu0 %v157_v42  ;;  %1783 = vmatpush3.msra.mxu0 %v639_v57  ;;  %v2470_v57 = vld [vmem:[#allocation2 + $0x20] sm:$0xff]  }
  0x6e   :  { %1784 = vmatprep.subr.mxu0 %v638_v58 }
  0x6f   :  { %1785 = vmatpush3.msra.mxu0 %v638_v58  ;;  %v2474_v58 = vld [vmem:[#allocation2 + $0x28] sm:$0xff]  }
  0x70   :  { %1727 = vmatmul.mubr.f32.gmra.mxu0 %v158_v43  ;;  %1786 = vmatprep.subr.mxu0 %v637_v59 }
  0x71   :  { %1729 = vmatprep.mubr.f32.mxu0 %v159_v44  ;;  %1787 = vmatpush3.msra.mxu0 %v637_v59  ;;  %v2476_v59 = vld [vmem:[#allocation2 + $0x30] sm:$0xff]  }
  0x72   :  { %1788 = vmatprep.subr.mxu0 %v636_v60 }
  0x73   :  { %1789 = vmatpush3.msra.mxu0 %v636_v60  ;;  %v2480_v60 = vld [vmem:[#allocation2 + $0x38] sm:$0xff]  }
  0x74   :  { %1730 = vmatmul.mubr.f32.gmra.mxu0 %v160_v45 }
  0x75   :  { %1732 = vmatprep.mubr.f32.mxu0 %v161_v46 }
  0x78   :  { %1733 = vmatmul.mubr.f32.gmra.mxu0 %v162_v47 }
  0x79   :  { %1735 = vmatprep.mubr.f32.mxu0 %v163_v48 }
  0x7c   :  { %1736 = vmatmul.mubr.f32.gmra.mxu0 %v164_v49 }
  0xbd   :  { %v2414_v4 = vpop.permute.xlu1 %388 }
  0xbe   :  { %v2412_v2 = vpop.permute.xlu0 %398 }
  0xc1   :  { %v2418_v9 = vpop.permute.xlu1 %393 }
  0xc2   :  { %v2416_v7 = vpop.permute.xlu0 %403 }
  0xc5   :  { %v2422_v14 = vpop.permute.xlu1 %383 }
  0xc6   :  { %v2420_v12 = vpop.permute.xlu0 %378 }
  0xc9   :  { %v2426_v19 = vpop.permute.xlu1 %373 }
  0xca   :  { %v2424_v17 = vpop.permute.xlu0 %368 }
  0xcd   :  { %v2435_v29 = vpop.permute.xlu1 %363 }
  0xce   :  { %v2432_v26 = vpop.permute.xlu0 %358 }
  0xd1   :  { %v2442_v35 = vpop.permute.xlu1 %353 }
  0xd2   :  { %v2439_v33 = vpop.permute.xlu0 %348 }
  0xd5   :  { %v2449_v42 = vpop.permute.xlu1 %343 }
  0xd6   :  { %v2446_v39 = vpop.permute.xlu0 %338 }
  0xd9   :  { %v2456_v48 = vpop.permute.xlu1 %333 }
  0xda   :  { %v2453_v46 = vpop.permute.xlu0 %328 }
 0x120   :  { %v2408_v61 = vpop.f32.mrf.mxu0 }
 0x121   :  { %v407_v52 = vmul.f32 %v2408_v61, %v2456_v48  ;;  %v635_v61 = vld [vmem:[#allocation7 + $0x28] sm:$0xff] }
 0x122   :  { %v2410_v62 = vpop.f32.mrf.mxu0  ;;  %1790 = vmatprep.subr.mxu0 %v635_v61 }
 0x123   :  { %v406_v51 = vmul.f32 %v2453_v46, %v2410_v62  ;;  %1791 = vmatpush3.msra.mxu0 %v635_v61  ;;  %v634_v62 = vld [vmem:[#allocation7 + $0x20] sm:$0xff] }
 0x124   :  { %v1719_v63 = vpop.f32.mrf.mxu0  ;;  %1792 = vmatprep.subr.mxu0 %v634_v62 }
 0x125   :  { %v409_v47 = vmul.f32 %v1719_v63, %v2449_v42  ;;  %v422_v53 = vpack.c.bf16 %v407_v52, %v406_v51  ;;  %1793 = vmatpush3.msra.mxu0 %v634_v62  ;;  %v633_v63 = vld [vmem:[#allocation7 + $0x18] sm:$0xff] }
 0x126   :  { %v257_v0 = vpop.f32.mrf.mxu0  ;;  %1794 = vmatprep.subr.mxu0 %v633_v63 }
 0x127   :  { %v408_v44 = vmul.f32 %v2446_v39, %v257_v0  ;;  %1795 = vmatpush3.msra.mxu0 %v633_v63  ;;  %v632_v0 = vld [vmem:[#allocation7 + $0x10] sm:$0xff] }
 0x128   :  { %v1722_v1 = vpop.f32.mrf.mxu0  ;;  %1796 = vmatprep.subr.mxu0 %v632_v0 }
 0x129   :  { %v411_v43 = vmul.f32 %v1722_v1, %v2442_v35  ;;  %v423_v49 = vpack.c.bf16 %v409_v47, %v408_v44  ;;  %1797 = vmatpush3.msra.mxu0 %v632_v0  ;;  %v631_v1 = vld [vmem:[#allocation7 + $0x8] sm:$0xff] }
 0x12a   :  { %v267_v3 = vpop.f32.mrf.mxu0  ;;  %1798 = vmatprep.subr.mxu0 %v631_v1 }
 0x12b   :  { %v410_v40 = vmul.f32 %v2439_v33, %v267_v3  ;;  %1799 = vmatpush3.msra.mxu0 %v631_v1  ;;  %v630_v3 = vld [vmem:[#allocation7] sm:$0xff] }
 0x12c   :  { %v1725_v5 = vpop.f32.mrf.mxu0  ;;  %1800 = vmatprep.subr.mxu0 %v630_v3 }
 0x12d   :  { %v413_v38 = vmul.f32 %v1725_v5, %v2435_v29  ;;  %v424_v45 = vpack.c.bf16 %v411_v43, %v410_v40  ;;  %1801 = vmatpush3.msra.mxu0 %v630_v3 }
 0x12e   :  { %v277_v6 = vpop.f32.mrf.mxu0 }
 0x12f   :  { %v412_v36 = vmul.f32 %v2432_v26, %v277_v6 }
 0x130   :  { %v1728_v8 = vpop.f32.mrf.mxu0 }
 0x131   :  { %v415_v34 = vmul.f32 %v1728_v8, %v2426_v19  ;;  %v425_v41 = vpack.c.bf16 %v413_v38, %v412_v36 }
 0x132   :  { %v287_v10 = vpop.f32.mrf.mxu0 }
 0x133   :  { %v414_v31 = vmul.f32 %v2424_v17, %v287_v10 }
 0x134   :  { %v1731_v11 = vpop.f32.mrf.mxu0 }
 0x135   :  { %v417_v30 = vmul.f32 %v1731_v11, %v2422_v14  ;;  %v426_v37 = vpack.c.bf16 %v415_v34, %v414_v31  ;;  %v2489_v11 = vld [vmem:[%s2680_s4] ss:$0 sm:$0xff] }
 0x136   :  { %v297_v13 = vpop.f32.mrf.mxu0 }
 0x137   :  { %v416_v27 = vmul.f32 %v2420_v12, %v297_v13 }
 0x138   :  { %v1734_v15 = vpop.f32.mrf.mxu0 }
 0x139   :  { %v419_v24 = vmul.f32 %v1734_v15, %v2418_v9  ;;  %v427_v32 = vpack.c.bf16 %v417_v30, %v416_v27 }
 0x13a   :  { %v307_v16 = vpop.f32.mrf.mxu0 }
 0x13b   :  { %v418_v21 = vmul.f32 %v2414_v4, %v307_v16 }
 0x13c   :  { %v1737_v18 = vpop.f32.mrf.mxu0 }
 0x13d   :  { %v421_v22 = vmul.f32 %v1737_v18, %v2416_v7  ;;  %v428_v28 = vpack.c.bf16 %v419_v24, %v418_v21 }
 0x13e   :  { %v317_v20 = vpop.f32.mrf.mxu0 }
 0x13f   :  { %v420_v23 = vmul.f32 %v2412_v2, %v317_v20 }
 0x141   :  { %v429_v25 = vpack.c.bf16 %v421_v22, %v420_v23 }
 0x143   :  { %1738 = vmatprep.subr.bf16.mxu1 %v429_v25 }
 0x144   :  { %1739 = vmatpush3.bf16.msra.mxu1 %v429_v25 }
 0x145   :  { %1740 = vmatprep.subr.bf16.mxu1 %v428_v28 }
 0x148   :  { %1741 = vmatpush3.bf16.msra.mxu1 %v428_v28 }
 0x149   :  { %1742 = vmatprep.subr.bf16.mxu1 %v427_v32 }
 0x14c   :  { %1743 = vmatpush3.bf16.msra.mxu1 %v427_v32 }
 0x14d   :  { %1744 = vmatprep.subr.bf16.mxu1 %v426_v37 }
 0x150   :  { %1745 = vmatpush3.bf16.msra.mxu1 %v426_v37 }
 0x151   :  { %1746 = vmatprep.subr.bf16.mxu1 %v425_v41 }
 0x154   :  { %1747 = vmatpush3.bf16.msra.mxu1 %v425_v41 }
 0x155   :  { %1748 = vmatprep.subr.bf16.mxu1 %v424_v45 }
 0x158   :  { %1749 = vmatpush3.bf16.msra.mxu1 %v424_v45 }
 0x159   :  { %1750 = vmatprep.subr.bf16.mxu1 %v423_v49 }
 0x15c   :  { %1751 = vmatpush3.bf16.msra.mxu1 %v423_v49 }
 0x15d   :  { %1752 = vmatprep.subr.bf16.mxu1 %v422_v53 }
 0x160   :  { %1753 = vmatpush3.bf16.msra.mxu1 %v422_v53 }
 0x163   :  { %1755 = vmatmul.mubr.bf16.vlgmr.msra.gmra.mxu1 %v2462_v54 }
 0x164   :  { %1758 = vmatprep.mubr.bf16.mxu1 %v2464_v55 }
 0x16b   :  { %1759 = vmatmul.mubr.bf16.gmra.mxu1 %v2468_v56 }
 0x16c   :  { %1762 = vmatprep.mubr.bf16.mxu1 %v2470_v57 }
 0x173   :  { %1763 = vmatmul.mubr.bf16.gmra.mxu1 %v2474_v58 }
 0x174   :  { %1766 = vmatprep.mubr.bf16.mxu1 %v2476_v59 }
 0x17b   :  { %1767 = vmatmul.mubr.bf16.gmra.mxu1 %v2480_v60 }
 0x17c   :  { %1842 = vmatprep.mubr.bf16.mxu1 %v2405_v50 }
 0x223   :  { %v1756_v5 = vpop.f32.mrf.mxu1 }
 0x224   :  { %v577_v10 = vmul.f32 %v1756_v5, %v2446_v39 }
 0x225   :  { %v512_v6 = vpop.f32.mrf.mxu1 }
 0x226   :  { %v575_v8 = vmul.f32 %v512_v6, %v2453_v46  ;;  %v600_v22 = vadd.f32 %v2489_v11, %v577_v10 }
 0x227   :  { %v1757_v13 = vpop.f32.mrf.mxu1 }
 0x228   :  { %v598_v15 = vadd.f32 %v2489_v11, %v575_v8  ;;  %v578_v20 = vmul.f32 %v1757_v13, %v2449_v42  ;;  %v616_v31 = vmax.f32 %v600_v22, 0.0 }
 0x229   :  { %v515_v16 = vpop.f32.mrf.mxu1 }
 0x22a   :  { %v614_v18 = vmax.f32 %v598_v15, 0.0  ;;  %v576_v21 = vmul.f32 %v515_v16, %v2456_v48  ;;  %v601_v27 = vadd.f32 %v2489_v11, %v578_v20 }
 0x22b   :  { %v1760_v23 = vpop.f32.mrf.mxu1 }
 0x22c   :  { %v599_v24 = vadd.f32 %v2489_v11, %v576_v21  ;;  %1802 = vmatprep.mubr.f32.mxu0 %v614_v18  ;;  %v581_v32 = vmul.f32 %v1760_v23, %v2432_v26  ;;  %v617_v38 = vmax.f32 %v601_v27, 0.0 }
 0x22d   :  { %v528_v25 = vpop.f32.mrf.mxu1 }
 0x22e   :  { %v615_v28 = vmax.f32 %v599_v24, 0.0  ;;  %v579_v30 = vmul.f32 %v528_v25, %v2439_v33  ;;  %v604_v44 = vadd.f32 %v2489_v11, %v581_v32 }
 0x22f   :  { %v1761_v34 = vpop.f32.mrf.mxu1 }
 0x230   :  { %v602_v36 = vadd.f32 %v2489_v11, %v579_v30  ;;  %1803 = vmatmul.mubr.f32.vlgmr.msra.gmra.mxu0 %v615_v28  ;;  %v582_v41 = vmul.f32 %v1761_v34, %v2435_v29  ;;  %v620_v61 = vmax.f32 %v604_v44, 0.0  ;;  %v981_v44 = vld [vmem:[#allocation8 + $0x70] sm:$0xff] }
 0x231   :  { %v531_v37 = vpop.f32.mrf.mxu1  ;;  %1805 = vmatprep.mubr.f32.mxu0 %v616_v31 }
 0x232   :  { %v618_v40 = vmax.f32 %v602_v36, 0.0  ;;  %v580_v43 = vmul.f32 %v531_v37, %v2442_v35  ;;  %v605_v51 = vadd.f32 %v2489_v11, %v582_v41 }
 0x233   :  { %v1764_v45 = vpop.f32.mrf.mxu1 }
 0x234   :  { %v603_v47 = vadd.f32 %v2489_v11, %v580_v43  ;;  %1806 = vmatmul.mubr.f32.gmra.mxu0 %v617_v38  ;;  %v585_v62 = vmul.f32 %v1764_v45, %v2420_v12  ;;  %v621_v3 = vmax.f32 %v605_v51, 0.0  ;;  %v982_v43 = vld [vmem:[#allocation8 + $0x78] sm:$0xff]  ;;  %v980_v45 = vld [vmem:[#allocation8 + $0x68] sm:$0xff] }
 0x235   :  { %v544_v49 = vpop.f32.mrf.mxu1  ;;  %1808 = vmatprep.mubr.f32.mxu0 %v618_v40  ;;  %1858 = vmatprep.subr.mxu0 %v982_v43  ;;  %v976_v51 = vld [vmem:[#allocation8 + $0x48] sm:$0xff] }
 0x236   :  { %v619_v52 = vmax.f32 %v603_v47, 0.0  ;;  %v583_v53 = vmul.f32 %v544_v49, %v2424_v17  ;;  %v608_v10 = vadd.f32 %v2489_v11, %v585_v62  ;;  %1859 = vmatpush3.msra.mxu0 %v982_v43  ;;  %v979_v47 = vld [vmem:[#allocation8 + $0x60] sm:$0xff]  ;;  %v978_v49 = vld [vmem:[#allocation8 + $0x58] sm:$0xff] }
 0x237   :  { %v1765_v63 = vpop.f32.mrf.mxu1  ;;  %1860 = vmatprep.subr.mxu0 %v981_v44 }
 0x238   :  { %v606_v0 = vadd.f32 %v2489_v11, %v583_v53  ;;  %1809 = vmatmul.mubr.f32.gmra.mxu0 %v619_v52  ;;  %v586_v6 = vmul.f32 %v1765_v63, %v2422_v14  ;;  %v624_v22 = vmax.f32 %v608_v10, 0.0  ;;  %v975_v52 = vld [vmem:[#allocation8 + $0x40] sm:$0xff]  ;;  %v974_v53 = vld [vmem:[#allocation8 + $0x38] sm:$0xff] }
 0x239   :  { %v547_v1 = vpop.f32.mrf.mxu1  ;;  %1811 = vmatprep.mubr.f32.mxu0 %v620_v61  ;;  %1861 = vmatpush3.msra.mxu0 %v981_v44  ;;  %v973_v61 = vld [vmem:[#allocation8 + $0x30] sm:$0xff] }
 0x23a   :  { %v622_v5 = vmax.f32 %v606_v0, 0.0  ;;  %v584_v8 = vmul.f32 %v547_v1, %v2426_v19  ;;  %v609_v18 = vadd.f32 %v2489_v11, %v586_v6  ;;  %1862 = vmatprep.subr.mxu0 %v980_v45 }
 0x23b   :  { %v1768_v13 = vpop.f32.mrf.mxu1  ;;  %1863 = vmatpush3.msra.mxu0 %v980_v45 }
 0x23c   :  { %v607_v15 = vadd.f32 %v2489_v11, %v584_v8  ;;  %1812 = vmatmul.mubr.f32.gmra.mxu0 %v621_v3  ;;  %v589_v23 = vmul.f32 %v1768_v13, %v2412_v2  ;;  %v625_v28 = vmax.f32 %v609_v18, 0.0  ;;  %1864 = vmatprep.subr.mxu0 %v979_v47 }
 0x23d   :  { %v560_v16 = vpop.f32.mrf.mxu1  ;;  %1814 = vmatprep.mubr.f32.mxu0 %v622_v5  ;;  %1865 = vmatpush3.msra.mxu0 %v979_v47 }
 0x23e   :  { %v623_v20 = vmax.f32 %v607_v15, 0.0  ;;  %v587_v21 = vmul.f32 %v560_v16, %v2414_v4  ;;  %v612_v34 = vadd.f32 %v2489_v11, %v589_v23  ;;  %1866 = vmatprep.subr.mxu0 %v978_v49 }
 0x23f   :  { %v1769_v24 = vpop.f32.mrf.mxu1  ;;  %1867 = vmatpush3.msra.mxu0 %v978_v49 }
 0x240   :  { %v610_v25 = vadd.f32 %v2489_v11, %v587_v21  ;;  %1815 = vmatmul.mubr.f32.gmra.mxu0 %v623_v20  ;;  %v590_v31 = vmul.f32 %v1769_v24, %v2416_v7  ;;  %v628_v40 = vmax.f32 %v612_v34, 0.0 }
 0x241   :  { %v563_v27 = vpop.f32.mrf.mxu1  ;;  %1817 = vmatprep.mubr.f32.mxu0 %v624_v22 }
 0x242   :  { %v626_v30 = vmax.f32 %v610_v25, 0.0  ;;  %v588_v32 = vmul.f32 %v563_v27, %v2418_v9  ;;  %v613_v37 = vadd.f32 %v2489_v11, %v590_v31 }
 0x244   :  { %v611_v36 = vadd.f32 %v2489_v11, %v588_v32  ;;  %1818 = vmatmul.mubr.f32.gmra.mxu0 %v625_v28  ;;  %v629_v41 = vmax.f32 %v613_v37, 0.0  ;;  %v977_v11 = vld [vmem:[#allocation8 + $0x50] sm:$0xff] }
 0x245   :  { %1820 = vmatprep.mubr.f32.mxu0 %v626_v30  ;;  %1868 = vmatprep.subr.mxu0 %v977_v11 }
 0x246   :  { %v627_v38 = vmax.f32 %v611_v36, 0.0  ;;  %1869 = vmatpush3.msra.mxu0 %v977_v11 }
 0x247   :  { %1870 = vmatprep.subr.mxu0 %v976_v51 }
 0x248   :  { %1821 = vmatmul.mubr.f32.gmra.mxu0 %v627_v38 }
 0x249   :  { %1823 = vmatprep.mubr.f32.mxu0 %v628_v40  ;;  %1871 = vmatpush3.msra.mxu0 %v976_v51 }
 0x24a   :  { %1872 = vmatprep.subr.mxu0 %v975_v52 }
 0x24b   :  { %1873 = vmatpush3.msra.mxu0 %v975_v52 }
 0x24c   :  { %1824 = vmatmul.mubr.f32.gmra.mxu0 %v629_v41  ;;  %1874 = vmatprep.subr.mxu0 %v974_v53 }
 0x24d   :  { %1875 = vmatpush3.msra.mxu0 %v974_v53 }
 0x24e   :  { %1876 = vmatprep.subr.mxu0 %v973_v61 }
 0x24f   :  { %1877 = vmatpush3.msra.mxu0 %v973_v61 }
 0x2f0   :  { %v1804_v62 = vpop.f32.mrf.mxu0 }
 0x2f1   :  { %v792_v53 = vmul.f32 %v1804_v62, %v2456_v48  ;;  %v972_v62 = vld [vmem:[#allocation8 + $0x28] sm:$0xff] }
 0x2f2   :  { %v712_v63 = vpop.f32.mrf.mxu0  ;;  %1878 = vmatprep.subr.mxu0 %v972_v62 }
 0x2f3   :  { %v791_v51 = vmul.f32 %v712_v63, %v2453_v46  ;;  %1879 = vmatpush3.msra.mxu0 %v972_v62  ;;  %v971_v63 = vld [vmem:[#allocation8 + $0x20] sm:$0xff] }
 0x2f4   :  { %v1807_v0 = vpop.f32.mrf.mxu0  ;;  %1880 = vmatprep.subr.mxu0 %v971_v63 }
 0x2f5   :  { %v794_v11 = vmul.f32 %v1807_v0, %v2449_v42  ;;  %v807_v61 = vpack.c.bf16 %v792_v53, %v791_v51  ;;  %1881 = vmatpush3.msra.mxu0 %v971_v63  ;;  %v970_v0 = vld [vmem:[#allocation8 + $0x18] sm:$0xff] }
 0x2f6   :  { %v722_v1 = vpop.f32.mrf.mxu0  ;;  %1882 = vmatprep.subr.mxu0 %v970_v0 }
 0x2f7   :  { %v793_v47 = vmul.f32 %v722_v1, %v2446_v39  ;;  %1883 = vmatpush3.msra.mxu0 %v970_v0  ;;  %v969_v1 = vld [vmem:[#allocation8 + $0x10] sm:$0xff] }
 0x2f8   :  { %v1810_v3 = vpop.f32.mrf.mxu0  ;;  %1884 = vmatprep.subr.mxu0 %v969_v1 }
 0x2f9   :  { %v796_v45 = vmul.f32 %v1810_v3, %v2442_v35  ;;  %v808_v52 = vpack.c.bf16 %v794_v11, %v793_v47  ;;  %1885 = vmatpush3.msra.mxu0 %v969_v1  ;;  %v968_v3 = vld [vmem:[#allocation8 + $0x8] sm:$0xff] }
 0x2fa   :  { %v732_v5 = vpop.f32.mrf.mxu0  ;;  %1886 = vmatprep.subr.mxu0 %v968_v3 }
 0x2fb   :  { %v795_v43 = vmul.f32 %v732_v5, %v2439_v33  ;;  %1887 = vmatpush3.msra.mxu0 %v968_v3  ;;  %v967_v5 = vld [vmem:[#allocation8] sm:$0xff] }
 0x2fc   :  { %v1813_v6 = vpop.f32.mrf.mxu0  ;;  %1888 = vmatprep.subr.mxu0 %v967_v5 }
 0x2fd   :  { %v798_v41 = vmul.f32 %v1813_v6, %v2435_v29  ;;  %v809_v49 = vpack.c.bf16 %v796_v45, %v795_v43  ;;  %1889 = vmatpush3.msra.mxu0 %v967_v5 }
 0x2fe   :  { %v742_v8 = vpop.f32.mrf.mxu0 }
 0x2ff   :  { %v797_v38 = vmul.f32 %v742_v8, %v2432_v26 }
 0x300   :  { %v1816_v10 = vpop.f32.mrf.mxu0 }
 0x301   :  { %v800_v37 = vmul.f32 %v1816_v10, %v2426_v19  ;;  %v810_v44 = vpack.c.bf16 %v798_v41, %v797_v38 }
 0x302   :  { %v752_v13 = vpop.f32.mrf.mxu0 }
 0x303   :  { %v799_v34 = vmul.f32 %v752_v13, %v2424_v17  ;;  %v2550_v13 = vld [vmem:[%s2682_s6] ss:$0 sm:$0xff] }
 0x304   :  { %v1819_v15 = vpop.f32.mrf.mxu0 }
 0x305   :  { %v802_v32 = vmul.f32 %v1819_v15, %v2422_v14  ;;  %v811_v40 = vpack.c.bf16 %v800_v37, %v799_v34 }
 0x306   :  { %v762_v16 = vpop.f32.mrf.mxu0 }
 0x307   :  { %v801_v30 = vmul.f32 %v762_v16, %v2420_v12 }
 0x308   :  { %v1822_v18 = vpop.f32.mrf.mxu0 }
 0x309   :  { %v804_v27 = vmul.f32 %v1822_v18, %v2418_v9  ;;  %v812_v36 = vpack.c.bf16 %v802_v32, %v801_v30 }
 0x30a   :  { %v772_v20 = vpop.f32.mrf.mxu0 }
 0x30b   :  { %v803_v23 = vmul.f32 %v772_v20, %v2414_v4 }
 0x30c   :  { %v1825_v21 = vpop.f32.mrf.mxu0 }
 0x30d   :  { %v806_v24 = vmul.f32 %v1825_v21, %v2416_v7  ;;  %v813_v31 = vpack.c.bf16 %v804_v27, %v803_v23 }
 0x30e   :  { %v782_v22 = vpop.f32.mrf.mxu0 }
 0x30f   :  { %v805_v25 = vmul.f32 %v782_v22, %v2412_v2 }
 0x311   :  { %v814_v28 = vpack.c.bf16 %v806_v24, %v805_v25 }
 0x313   :  { %1826 = vmatprep.subr.bf16.mxu1 %v814_v28 }
 0x314   :  { %1827 = vmatpush3.bf16.msra.mxu1 %v814_v28 }
 0x315   :  { %1828 = vmatprep.subr.bf16.mxu1 %v813_v31 }
 0x318   :  { %1829 = vmatpush3.bf16.msra.mxu1 %v813_v31 }
 0x319   :  { %1830 = vmatprep.subr.bf16.mxu1 %v812_v36 }
 0x31c   :  { %1831 = vmatpush3.bf16.msra.mxu1 %v812_v36 }
 0x31d   :  { %1832 = vmatprep.subr.bf16.mxu1 %v811_v40 }
 0x320   :  { %1833 = vmatpush3.bf16.msra.mxu1 %v811_v40 }
 0x321   :  { %1834 = vmatprep.subr.bf16.mxu1 %v810_v44 }
 0x324   :  { %1835 = vmatpush3.bf16.msra.mxu1 %v810_v44 }
 0x325   :  { %1836 = vmatprep.subr.bf16.mxu1 %v809_v49 }
 0x328   :  { %1837 = vmatpush3.bf16.msra.mxu1 %v809_v49 }
 0x329   :  { %1838 = vmatprep.subr.bf16.mxu1 %v808_v52 }
 0x32c   :  { %1839 = vmatpush3.bf16.msra.mxu1 %v808_v52 }
 0x32d   :  { %1840 = vmatprep.subr.bf16.mxu1 %v807_v61 }
 0x330   :  { %1841 = vmatpush3.bf16.msra.mxu1 %v807_v61 }
 0x333   :  { %1843 = vmatmul.mubr.bf16.vlgmr.msra.gmra.mxu1 %v2462_v54 }
 0x334   :  { %1846 = vmatprep.mubr.bf16.mxu1 %v2464_v55 }
 0x33b   :  { %1847 = vmatmul.mubr.bf16.gmra.mxu1 %v2468_v56 }
 0x33c   :  { %1850 = vmatprep.mubr.bf16.mxu1 %v2470_v57 }
 0x343   :  { %1851 = vmatmul.mubr.bf16.gmra.mxu1 %v2474_v58 }
 0x344   :  { %1854 = vmatprep.mubr.bf16.mxu1 %v2476_v59 }
 0x34b   :  { %1855 = vmatmul.mubr.bf16.gmra.mxu1 %v2480_v60 }
 0x34c   :  { %1930 = vmatprep.mubr.bf16.mxu1 %v2405_v50 }
 0x3f3   :  { %v1844_v6 = vpop.f32.mrf.mxu1 }
 0x3f4   :  { %v914_v10 = vmul.f32 %v1844_v6, %v2446_v39 }
 0x3f5   :  { %v849_v50 = vpop.f32.mrf.mxu1 }
 0x3f6   :  { %v912_v8 = vmul.f32 %v849_v50, %v2453_v46  ;;  %v937_v23 = vadd.f32 %v2550_v13, %v914_v10 }
 0x3f7   :  { %v1845_v15 = vpop.f32.mrf.mxu1 }
 0x3f8   :  { %v935_v16 = vadd.f32 %v2550_v13, %v912_v8  ;;  %v915_v21 = vmul.f32 %v1845_v15, %v2449_v42  ;;  %v953_v32 = vmax.f32 %v937_v23, 0.0 }
 0x3f9   :  { %v852_v18 = vpop.f32.mrf.mxu1 }
 0x3fa   :  { %v951_v20 = vmax.f32 %v935_v16, 0.0  ;;  %v913_v22 = vmul.f32 %v852_v18, %v2456_v48  ;;  %v938_v28 = vadd.f32 %v2550_v13, %v915_v21 }
 0x3fb   :  { %v1848_v24 = vpop.f32.mrf.mxu1 }
 0x3fc   :  { %v936_v25 = vadd.f32 %v2550_v13, %v913_v22  ;;  %1890 = vmatprep.mubr.f32.mxu0 %v951_v20  ;;  %v918_v34 = vmul.f32 %v1848_v24, %v2432_v26  ;;  %v954_v40 = vmax.f32 %v938_v28, 0.0 }
 0x3fd   :  { %v865_v27 = vpop.f32.mrf.mxu1 }
 0x3fe   :  { %v952_v30 = vmax.f32 %v936_v25, 0.0  ;;  %v916_v31 = vmul.f32 %v865_v27, %v2439_v33  ;;  %v941_v45 = vadd.f32 %v2550_v13, %v918_v34 }
 0x3ff   :  { %v1849_v36 = vpop.f32.mrf.mxu1 }
 0x400   :  { %v939_v37 = vadd.f32 %v2550_v13, %v916_v31  ;;  %1891 = vmatmul.mubr.f32.vlgmr.msra.gmra.mxu0 %v952_v30  ;;  %v919_v43 = vmul.f32 %v1849_v36, %v2435_v29  ;;  %v957_v61 = vmax.f32 %v941_v45, 0.0 }
 0x401   :  { %v868_v38 = vpop.f32.mrf.mxu1  ;;  %1893 = vmatprep.mubr.f32.mxu0 %v953_v32 }
 0x402   :  { %v955_v41 = vmax.f32 %v939_v37, 0.0  ;;  %v917_v44 = vmul.f32 %v868_v38, %v2442_v35  ;;  %v942_v51 = vadd.f32 %v2550_v13, %v919_v43 }
 0x403   :  { %v1852_v47 = vpop.f32.mrf.mxu1 }
 0x404   :  { %v940_v49 = vadd.f32 %v2550_v13, %v917_v44  ;;  %1894 = vmatmul.mubr.f32.gmra.mxu0 %v954_v40  ;;  %v922_v62 = vmul.f32 %v1852_v47, %v2420_v12  ;;  %v958_v3 = vmax.f32 %v942_v51, 0.0 }
 0x405   :  { %v881_v11 = vpop.f32.mrf.mxu1  ;;  %1896 = vmatprep.mubr.f32.mxu0 %v955_v41 }
 0x406   :  { %v956_v52 = vmax.f32 %v940_v49, 0.0  ;;  %v920_v53 = vmul.f32 %v881_v11, %v2424_v17  ;;  %v945_v8 = vadd.f32 %v2550_v13, %v922_v62 }
 0x407   :  { %v1853_v63 = vpop.f32.mrf.mxu1 }
 0x408   :  { %v943_v0 = vadd.f32 %v2550_v13, %v920_v53  ;;  %1897 = vmatmul.mubr.f32.gmra.mxu0 %v956_v52  ;;  %v923_v6 = vmul.f32 %v1853_v63, %v2422_v14  ;;  %v961_v22 = vmax.f32 %v945_v8, 0.0 }
 0x409   :  { %v884_v1 = vpop.f32.mrf.mxu1  ;;  %1899 = vmatprep.mubr.f32.mxu0 %v957_v61 }
 0x40a   :  { %v959_v5 = vmax.f32 %v943_v0, 0.0  ;;  %v921_v50 = vmul.f32 %v884_v1, %v2426_v19  ;;  %v946_v18 = vadd.f32 %v2550_v13, %v923_v6 }
 0x40b   :  { %v1856_v10 = vpop.f32.mrf.mxu1 }
 0x40c   :  { %v944_v15 = vadd.f32 %v2550_v13, %v921_v50  ;;  %1900 = vmatmul.mubr.f32.gmra.mxu0 %v958_v3  ;;  %v926_v23 = vmul.f32 %v1856_v10, %v2412_v2  ;;  %v962_v28 = vmax.f32 %v946_v18, 0.0 }
 0x40d   :  { %v897_v16 = vpop.f32.mrf.mxu1  ;;  %1902 = vmatprep.mubr.f32.mxu0 %v959_v5 }
 0x40e   :  { %v960_v20 = vmax.f32 %v944_v15, 0.0  ;;  %v924_v21 = vmul.f32 %v897_v16, %v2414_v4  ;;  %v949_v34 = vadd.f32 %v2550_v13, %v926_v23 }
 0x40f   :  { %v1857_v24 = vpop.f32.mrf.mxu1 }
 0x410   :  { %v947_v25 = vadd.f32 %v2550_v13, %v924_v21  ;;  %1903 = vmatmul.mubr.f32.gmra.mxu0 %v960_v20  ;;  %v927_v31 = vmul.f32 %v1857_v24, %v2416_v7  ;;  %v965_v40 = vmax.f32 %v949_v34, 0.0 }
 0x411   :  { %v900_v27 = vpop.f32.mrf.mxu1  ;;  %1905 = vmatprep.mubr.f32.mxu0 %v961_v22 }
 0x412   :  { %v963_v30 = vmax.f32 %v947_v25, 0.0  ;;  %v925_v32 = vmul.f32 %v900_v27, %v2418_v9  ;;  %v950_v37 = vadd.f32 %v2550_v13, %v927_v31 }
 0x414   :  { %v948_v36 = vadd.f32 %v2550_v13, %v925_v32  ;;  %1906 = vmatmul.mubr.f32.gmra.mxu0 %v962_v28  ;;  %v966_v41 = vmax.f32 %v950_v37, 0.0 }
 0x415   :  { %1908 = vmatprep.mubr.f32.mxu0 %v963_v30 }
 0x416   :  { %v964_v38 = vmax.f32 %v948_v36, 0.0 }
 0x418   :  { %1909 = vmatmul.mubr.f32.gmra.mxu0 %v964_v38 }
 0x419   :  { %1911 = vmatprep.mubr.f32.mxu0 %v965_v40 }
 0x41c   :  { %1912 = vmatmul.mubr.f32.gmra.mxu0 %v966_v41  ;;  %v2200_v41 = vmov 0.0  }
 0x41d   :  { %1946 = vmatprep.subr.mxu0 %v2200_v41  ;;  %1978 = vmatprep.mubr.msk.f32.mxu0 %vm2201_vm0, %v2200_v41 }
 0x4c0   :  { %v1892_v43 = vpop.f32.mrf.mxu0 }
 0x4c1   :  { %v1129_v38 = vmul.f32 %v1892_v43, %v2456_v48  ;;  %v1375_v43 = vld [vmem:[#allocation10 + $0x40] sm:$0xff] }
 0x4c2   :  { %v1049_v44 = vpop.f32.mrf.mxu0 }
 0x4c3   :  { %v1128_v36 = vmul.f32 %v1049_v44, %v2453_v46  ;;  %v1374_v44 = vld [vmem:[#allocation10 + $0x38] sm:$0xff] }
 0x4c4   :  { %v1895_v45 = vpop.f32.mrf.mxu0 }
 0x4c5   :  { %v1131_v34 = vmul.f32 %v1895_v45, %v2449_v42  ;;  %v1144_v40 = vpack.c.bf16 %v1129_v38, %v1128_v36  ;;  %v1373_v45 = vld [vmem:[#allocation10 + $0x30] sm:$0xff] }
 0x4c6   :  { %v1059_v47 = vpop.f32.mrf.mxu0 }
 0x4c7   :  { %v1130_v31 = vmul.f32 %v1059_v47, %v2446_v39  ;;  %v1372_v47 = vld [vmem:[#allocation10 + $0x28] sm:$0xff] }
 0x4c8   :  { %v1898_v49 = vpop.f32.mrf.mxu0 }
 0x4c9   :  { %v1133_v30 = vmul.f32 %v1898_v49, %v2442_v35  ;;  %v1145_v37 = vpack.c.bf16 %v1131_v34, %v1130_v31  ;;  %v1371_v49 = vld [vmem:[#allocation10 + $0x20] sm:$0xff] }
 0x4ca   :  { %v1069_v11 = vpop.f32.mrf.mxu0 }
 0x4cb   :  { %v1132_v27 = vmul.f32 %v1069_v11, %v2439_v33  ;;  %v1370_v11 = vld [vmem:[#allocation10 + $0x18] sm:$0xff] }
 0x4cc   :  { %v1901_v51 = vpop.f32.mrf.mxu0 }
 0x4cd   :  { %v1135_v25 = vmul.f32 %v1901_v51, %v2435_v29  ;;  %v1146_v32 = vpack.c.bf16 %v1133_v30, %v1132_v27  ;;  %v1369_v51 = vld [vmem:[#allocation10 + $0x10] sm:$0xff] }
 0x4ce   :  { %v1079_v52 = vpop.f32.mrf.mxu0 }
 0x4cf   :  { %v1134_v23 = vmul.f32 %v1079_v52, %v2432_v26 }
 0x4d0   :  { %v1904_v53 = vpop.f32.mrf.mxu0 }
 0x4d1   :  { %v1137_v22 = vmul.f32 %v1904_v53, %v2426_v19  ;;  %v1147_v28 = vpack.c.bf16 %v1135_v25, %v1134_v23 }
 0x4d2   :  { %v1089_v61 = vpop.f32.mrf.mxu0 }
 0x4d3   :  { %v1136_v20 = vmul.f32 %v1089_v61, %v2424_v17 }
 0x4d4   :  { %v1907_v62 = vpop.f32.mrf.mxu0 }
 0x4d5   :  { %v1139_v18 = vmul.f32 %v1907_v62, %v2422_v14  ;;  %v1148_v24 = vpack.c.bf16 %v1137_v22, %v1136_v20  ;;  %v1502_v20 = vld [vmem:[%s2684_s8] ss:$0 sm:$0xff] }
 0x4d6   :  { %v1099_v63 = vpop.f32.mrf.mxu0 }
 0x4d7   :  { %v1138_v15 = vmul.f32 %v1099_v63, %v2420_v12 }
 0x4d8   :  { %v1910_v0 = vpop.f32.mrf.mxu0 }
 0x4d9   :  { %v1141_v8 = vmul.f32 %v1910_v0, %v2418_v9  ;;  %v1149_v21 = vpack.c.bf16 %v1139_v18, %v1138_v15 }
 0x4da   :  { %v1109_v13 = vpop.f32.mrf.mxu0 }
 0x4db   :  { %v1140_v5 = vmul.f32 %v1109_v13, %v2414_v4 }
 0x4dc   :  { %v1913_v1 = vpop.f32.mrf.mxu0 }
 0x4dd   :  { %v1143_v6 = vmul.f32 %v1913_v1, %v2416_v7  ;;  %v1150_v16 = vpack.c.bf16 %v1141_v8, %v1140_v5 }
 0x4de   :  { %v1119_v3 = vpop.f32.mrf.mxu0 }
 0x4df   :  { %v1142_v50 = vmul.f32 %v1119_v3, %v2412_v2 }
 0x4e1   :  { %v1151_v10 = vpack.c.bf16 %v1143_v6, %v1142_v50 }
 0x4e3   :  { %1914 = vmatprep.subr.bf16.mxu1 %v1151_v10 }
 0x4e4   :  { %1915 = vmatpush3.bf16.msra.mxu1 %v1151_v10 }
 0x4e5   :  { %1916 = vmatprep.subr.bf16.mxu1 %v1150_v16 }
 0x4e8   :  { %1917 = vmatpush3.bf16.msra.mxu1 %v1150_v16 }
 0x4e9   :  { %1918 = vmatprep.subr.bf16.mxu1 %v1149_v21 }
 0x4ec   :  { %1919 = vmatpush3.bf16.msra.mxu1 %v1149_v21 }
 0x4ed   :  { %1920 = vmatprep.subr.bf16.mxu1 %v1148_v24 }
 0x4f0   :  { %1921 = vmatpush3.bf16.msra.mxu1 %v1148_v24 }
 0x4f1   :  { %1922 = vmatprep.subr.bf16.mxu1 %v1147_v28 }
 0x4f4   :  { %1923 = vmatpush3.bf16.msra.mxu1 %v1147_v28 }
 0x4f5   :  { %1924 = vmatprep.subr.bf16.mxu1 %v1146_v32 }
 0x4f8   :  { %1925 = vmatpush3.bf16.msra.mxu1 %v1146_v32 }
 0x4f9   :  { %1926 = vmatprep.subr.bf16.mxu1 %v1145_v37 }
 0x4fc   :  { %1927 = vmatpush3.bf16.msra.mxu1 %v1145_v37 }
 0x4fd   :  { %1928 = vmatprep.subr.bf16.mxu1 %v1144_v40 }
 0x500   :  { %1929 = vmatpush3.bf16.msra.mxu1 %v1144_v40 }
 0x501   :  { %1981 = vmatprep.subr.mxu1 %v2200_v41 }
 0x503   :  { %1931 = vmatmul.mubr.bf16.vlgmr.msra.gmra.mxu1 %v2462_v54  ;;  %v1382_v54 = vld [vmem:[#allocation10 + $0x78] sm:$0xff] }
 0x504   :  { %1934 = vmatprep.mubr.bf16.mxu1 %v2464_v55  ;;  %v1381_v55 = vld [vmem:[#allocation10 + $0x70] sm:$0xff]  ;;  %1982 = vmatpush3.msra.mxu1 %v1382_v54 }
 0x505   :  { %1983 = vmatprep.subr.mxu1 %v2200_v41 }
 0x506   :  { %1984 = vmatpush3.msra.mxu1 %v1381_v55 }
 0x507   :  { %1985 = vmatprep.subr.mxu1 %v2200_v41 }
 0x50b   :  { %1935 = vmatmul.mubr.bf16.gmra.mxu1 %v2468_v56  ;;  %v1380_v56 = vld [vmem:[#allocation10 + $0x68] sm:$0xff] }
 0x50c   :  { %1938 = vmatprep.mubr.bf16.mxu1 %v2470_v57  ;;  %v1379_v57 = vld [vmem:[#allocation10 + $0x60] sm:$0xff]  ;;  %1986 = vmatpush3.msra.mxu1 %v1380_v56  ;;  %v1368_v56 = vld [vmem:[#allocation10 + $0x8] sm:$0xff] }
 0x50d   :  { %1987 = vmatprep.subr.mxu1 %v2200_v41 }
 0x50e   :  { %1988 = vmatpush3.msra.mxu1 %v1379_v57  ;;  %v1363_v57 = vpop.permute.xlu0 %1362 }
 0x50f   :  { %1989 = vmatprep.subr.mxu1 %v2200_v41 }
 0x513   :  { %1939 = vmatmul.mubr.bf16.gmra.mxu1 %v2474_v58  ;;  %v1378_v58 = vld [vmem:[#allocation10 + $0x58] sm:$0xff] }
 0x514   :  { %1942 = vmatprep.mubr.bf16.mxu1 %v2476_v59  ;;  %v1377_v59 = vld [vmem:[#allocation10 + $0x50] sm:$0xff]  ;;  %1990 = vmatpush3.msra.mxu1 %v1378_v58 }
 0x515   :  { %1991 = vmatprep.subr.mxu1 %v2200_v41 }
 0x516   :  { %1992 = vmatpush3.msra.mxu1 %v1377_v59 }
 0x517   :  { %1993 = vmatprep.subr.mxu1 %v2200_v41 }
 0x51b   :  { %1943 = vmatmul.mubr.bf16.gmra.mxu1 %v2480_v60  ;;  %v1376_v60 = vld [vmem:[#allocation10 + $0x48] sm:$0xff] }
 0x51c   :  { %2013 = vmatprep.mubr.msk.f32.mxu1 %vm2201_vm0, %v2200_v41  ;;  %1994 = vmatpush3.msra.mxu1 %v1376_v60 }
 0x51d   :  { %1995 = vmatprep.subr.mxu1 %v2200_v41 }
 0x51e   :  { %1996 = vmatpush3.msra.mxu1 %v1375_v43 }
 0x51f   :  { %1997 = vmatprep.subr.mxu1 %v2200_v41 }
 0x520   :  { %1998 = vmatpush3.msra.mxu1 %v1374_v44 }
 0x521   :  { %1999 = vmatprep.subr.mxu1 %v2200_v41 }
 0x522   :  { %2000 = vmatpush3.msra.mxu1 %v1373_v45 }
 0x523   :  { %2001 = vmatprep.subr.mxu1 %v2200_v41 }
 0x524   :  { %2002 = vmatpush3.msra.mxu1 %v1372_v47 }
 0x525   :  { %2003 = vmatprep.subr.mxu1 %v2200_v41 }
 0x526   :  { %2004 = vmatpush3.msra.mxu1 %v1371_v49 }
 0x527   :  { %2005 = vmatprep.subr.mxu1 %v2200_v41 }
 0x528   :  { %2006 = vmatpush3.msra.mxu1 %v1370_v11 }
 0x529   :  { %2007 = vmatprep.subr.mxu1 %v2200_v41 }
 0x52a   :  { %2008 = vmatpush3.msra.mxu1 %v1369_v51 }
 0x52b   :  { %2009 = vmatprep.subr.mxu1 %v2200_v41 }
 0x52c   :  { %2010 = vmatpush3.msra.mxu1 %v1368_v56 }
 0x52d   :  { %2011 = vmatprep.subr.mxu1 %v2200_v41 }
 0x5c3   :  { %v1932_v52 = vpop.f32.mrf.mxu1 }
 0x5c5   :  { %v2623_v53 = vpop.f32.mrf.mxu1 }
 0x5c7   :  { %v1933_v61 = vpop.f32.mrf.mxu1 }
 0x5c9   :  { %v2625_v62 = vpop.f32.mrf.mxu1 }
 0x5ca   :  { %v1250_v54 = vmul.f32 %v2625_v62, %v2456_v48  ;;  %v1288_v48 = vld [vmem:[%s2685_s9] sm:$0xff]  ;;  %s2140_s9 = scalar_lea.vmem %s1478_s3, 128 }
 0x5cb   :  { %v1936_v63 = vpop.f32.mrf.mxu1  ;;  %p2141_p11 = scmp.ne.s32.totalorder %s1478_s3, %s2140_s9  ;;  %p2146_p13 = scmp.lt.s32.totalorder %s2140_s9, %s2140_s9 }
 0x5cc   :  { %v1273_v55 = vadd.f32 %v1502_v20, %v1250_v54 }
 0x5cd   :  { %v1202_v0 = vpop.f32.mrf.mxu1  ;;  %p2147_p0 = por %p2146_p13, %p2145_p12 }
 0x5ce   :  { %v1253_v37 = vmul.f32 %v1202_v0, %v2439_v33 }
 0x5cf   :  { %v1937_v13 = vpop.f32.mrf.mxu1  ;;  %p2148_p1 = pnand %p2147_p0, %p2141_p11 }
 0x5d0   :  { %v1276_v40 = vadd.f32 %v1502_v20, %v1253_v37 }
 0x5d1   :  { %v1205_v1 = vpop.f32.mrf.mxu1 }
 0x5d2   :  { %v1254_v36 = vmul.f32 %v1205_v1, %v2442_v35 }
 0x5d3   :  { %v1940_v3 = vpop.f32.mrf.mxu1 }
 0x5d4   :  { %v1277_v38 = vadd.f32 %v1502_v20, %v1254_v36 }
 0x5d5   :  { %v1218_v5 = vpop.f32.mrf.mxu1 }
 0x5d6   :  { %v1257_v31 = vmul.f32 %v1218_v5, %v2424_v17 }
 0x5d7   :  { %v1941_v6 = vpop.f32.mrf.mxu1 }
 0x5d8   :  { %v1260_v27 = vmul.f32 %v1941_v6, %v2422_v14  ;;  %v1256_v14 = vmul.f32 %v1937_v13, %v2435_v29  ;;  %v1280_v34 = vadd.f32 %v1502_v20, %v1257_v31  ;;  %v1252_v29 = vmul.f32 %v1933_v61, %v2449_v42 }
 0x5d9   :  { %v1221_v50 = vpop.f32.mrf.mxu1  ;;  %v1249_v42 = vmul.f32 %v2623_v53, %v2453_v46  ;;  %v1367_v46 = vld [vmem:[#allocation10] sm:$0xff] }
 0x5da   :  { %v1283_v30 = vadd.f32 %v1502_v20, %v1260_v27  ;;  %v1275_v35 = vadd.f32 %v1502_v20, %v1252_v29  ;;  %2012 = vmatpush3.msra.mxu1 %v1367_v46 }
 0x5db   :  { %v1944_v8 = vpop.f32.mrf.mxu1 }
 0x5dc   :  { %v1263_v16 = vmul.f32 %v1944_v8, %v2412_v2  ;;  %v1259_v2 = vmul.f32 %v1940_v3, %v2420_v12  ;;  %v1255_v12 = vmul.f32 %v1936_v63, %v2432_v26  ;;  %v1251_v26 = vmul.f32 %v1932_v52, %v2446_v39 }
 0x5dd   :  { %v1234_v10 = vpop.f32.mrf.mxu1  ;;  %v1272_v39 = vadd.f32 %v1502_v20, %v1249_v42 }
 0x5de   :  { %v1286_v24 = vadd.f32 %v1502_v20, %v1263_v16  ;;  %v1261_v25 = vmul.f32 %v1234_v10, %v2414_v4  ;;  %v1282_v4 = vadd.f32 %v1502_v20, %v1259_v2  ;;  %v1278_v17 = vadd.f32 %v1502_v20, %v1255_v12 }
 0x5df   :  { %v1945_v15 = vpop.f32.mrf.mxu1  ;;  %v1274_v33 = vadd.f32 %v1502_v20, %v1251_v26 }
 0x5e0   :  { %v1264_v18 = vmul.f32 %v1945_v15, %v2416_v7  ;;  %v1284_v7 = vadd.f32 %v1502_v20, %v1261_v25 }
 0x5e1   :  { %v1237_v21 = vpop.f32.mrf.mxu1 }
 0x5e2   :  { %v1287_v22 = vadd.f32 %v1502_v20, %v1264_v18  ;;  %v1262_v23 = vmul.f32 %v1237_v21, %v2418_v9  ;;  %v1258_v9 = vmul.f32 %v1221_v50, %v2426_v19  ;;  %v1279_v19 = vadd.f32 %v1502_v20, %v1256_v14 }
 0x5e4   :  { %1947 = vmatpush3.msra.mxu0 %v1287_v22  ;;  %v1285_v28 = vadd.f32 %v1502_v20, %v1262_v23  ;;  %v1281_v32 = vadd.f32 %v1502_v20, %v1258_v9 }
 0x5e5   :  { %1948 = vmatprep.subr.mxu0 %v2200_v41 }
 0x5e6   :  { %1949 = vmatpush3.msra.mxu0 %v1286_v24 }
 0x5e7   :  { %1950 = vmatprep.subr.mxu0 %v2200_v41 }
 0x5e8   :  { %1951 = vmatpush3.msra.mxu0 %v1285_v28 }
 0x5e9   :  { %1952 = vmatprep.subr.mxu0 %v2200_v41 }
 0x5ea   :  { %1953 = vmatpush3.msra.mxu0 %v1284_v7 }
 0x5eb   :  { %1954 = vmatprep.subr.mxu0 %v2200_v41 }
 0x5ec   :  { %1955 = vmatpush3.msra.mxu0 %v1283_v30 }
 0x5ed   :  { %1956 = vmatprep.subr.mxu0 %v2200_v41 }
 0x5ee   :  { %1957 = vmatpush3.msra.mxu0 %v1282_v4 }
 0x5ef   :  { %1958 = vmatprep.subr.mxu0 %v2200_v41 }
 0x5f0   :  { %1959 = vmatpush3.msra.mxu0 %v1281_v32 }
 0x5f1   :  { %1960 = vmatprep.subr.mxu0 %v2200_v41 }
 0x5f2   :  { %1961 = vmatpush3.msra.mxu0 %v1280_v34 }
 0x5f3   :  { %1962 = vmatprep.subr.mxu0 %v2200_v41 }
 0x5f4   :  { %1963 = vmatpush3.msra.mxu0 %v1279_v19 }
 0x5f5   :  { %1964 = vmatprep.subr.mxu0 %v2200_v41 }
 0x5f6   :  { %1965 = vmatpush3.msra.mxu0 %v1278_v17 }
 0x5f7   :  { %1966 = vmatprep.subr.mxu0 %v2200_v41 }
 0x5f8   :  { %1967 = vmatpush3.msra.mxu0 %v1277_v38 }
 0x5f9   :  { %1968 = vmatprep.subr.mxu0 %v2200_v41 }
 0x5fa   :  { %1969 = vmatpush3.msra.mxu0 %v1276_v40 }
 0x5fb   :  { %1970 = vmatprep.subr.mxu0 %v2200_v41 }
 0x5fc   :  { %1971 = vmatpush3.msra.mxu0 %v1275_v35 }
 0x5fd   :  { %1972 = vmatprep.subr.mxu0 %v2200_v41 }
 0x5fe   :  { %1973 = vmatpush3.msra.mxu0 %v1274_v33 }
 0x5ff   :  { %1974 = vmatprep.subr.mxu0 %v2200_v41 }
 0x600   :  { %1975 = vmatpush3.msra.mxu0 %v1273_v55 }
 0x601   :  { %1976 = vmatprep.subr.mxu0 %v2200_v41 }
 0x602   :  { %1977 = vmatpush3.msra.mxu0 %v1272_v39 }
 0x603   :  { %1979 = vmatmul.mubr.f32.vlgmr.msra.gmra.mxu0 %v1288_v48 }
 0x6c3   :  { %v1355_v58 = vpop.f32.mrf.mxu0 }
 0x6c4   :  { %v1365_v59 = vmul.f32 %v1363_v57, %v1355_v58 }
 0x6c5   :  { %v1980_v60 = vpop.f32.mrf.mxu0 }
 0x6c6   :  { %1366 = vst [vmem:[#allocation12] sm:$0xff] %v1365_v59  ;;  %2014 = vmatmul.mubr.f32.vlgmr.msra.gmra.mxu1 %v1365_v59 }
 0x6c7   :  { %2151 = shalt.err (!%p2148_p1)
}
 0x6c8   :  { %1480 = dma.vmem_to_hbm [thread:$0]  %s1478_s3, 128, %s2690_s14, [#allocation13]   ;;  %v1503_v41 = vld [vmem:[%s2688_s12] ss:$0 sm:$0xff] }
 0x6c9   :  { %s2203_s30 = smov [#allocation11]  }
 0x6ca   :  { %s1467_s15 = sshll.u32 %s2203_s30, 4  ;;  %s1468_s15 = int_to_ptr.vmem [resolvable:$true] %s1467_s15 }
 0x6cb   :  { %s2160_s18 = scalar_lea.vmem %s1468_s15, 128  ;;  %p2165_p3 = scmp.lt.s32.totalorder %s1468_s15, %s1468_s15 }
 0x6cc   :  { %p2161_p2 = scmp.ne.s32.totalorder %s1468_s15, %s2160_s18  ;;  %p2166_p4 = scmp.lt.s32.totalorder %s2160_s18, %s2160_s18 }
 0x6ce   :  { %p2167_p5 = por %p2166_p4, %p2165_p3 }
 0x6d0   :  { %p2168_p6 = pnand %p2167_p5, %p2161_p2 }
 0x786   :  { %v1456_v43 = vpop.f32.mrf.mxu1 }
 0x787   :  { %v1457_v44 = vadd.f32 %v1503_v41, %v1456_v43 }
 0x788   :  { %v2015_v45 = vpop.f32.mrf.mxu1 }
 0x789   :  { %1460 = vst [vmem:[#allocation11] sm:$0xff] %v1457_v44 }
 0x78a   :  { %2171 = shalt.err (!%p2168_p6)
}
 0x78b   :  { %1470 = dma.vmem_to_hbm [thread:$0]  %s1468_s15, 128, %s2689_s13, [#allocation4]  }
 0x78c   :  { %2186 = dma.done.wait [#allocation4], 128  }
 0x78d   :  { %2187 = vsyncadd [#allocation4], 4294967168 }
 0x78e   :  { %2188 = dma.done.wait [#allocation13], 128  }
 0x78f   :  { %2189 = vsyncadd [#allocation13], 4294967168 }
 0x790   :  { %1487 = vsyncpa [#allocation3], 1 }
 0x791   :  { %1488 = vsyncpa [#allocation6], 1 }
 0x792   :  { %1489 = vsyncpa [#allocation9], 1 }
 0x793   :  { %1490 = vsyncpa [#allocation4], 1 }
 0x794   :  { %1491 = vsyncpa [#allocation13], 1 }

</bundles_post_ra>
